<compile_context>
chip_gen: v6e
topology: v6e:2x2x1
jax: 0.10.0
libtpu: 0.0.40
codegen_flags: <defaults>
</compile_context>

<pallas_src>
import functools
import math

import jax
import jax.numpy as jnp
from jax.experimental import pallas as pl
from jax.experimental.pallas import tpu as pltpu

LN_EPS = 1e-5
NEG_INF = -1e9  # additive key-padding-mask value (finite stand-in for -inf)

_BIG_WEIGHTS = ("sa_wq", "sa_wk", "sa_wv", "sa_wo",
                "ca_wq", "ca_wk", "ca_wv", "ca_wo", "w1", "w2")
_VEC_ORDER = ("sa_bq", "sa_bk", "sa_bv", "sa_bo",
              "ca_bq", "ca_bk", "ca_bv", "ca_bo",
              "b2", "g1", "be1", "g2", "be2", "g3", "be3")
(SA_BQ, SA_BK, SA_BV, SA_BO,
 CA_BQ, CA_BK, CA_BV, CA_BO,
 R_B2, R_G1, R_BE1, R_G2, R_BE2, R_G3, R_BE3) = range(len(_VEC_ORDER))


def _decoder_stack_kernel(
    x_ref, ctx_ref, tkpm_ref, mkpm_ref,
    sa_wq, sa_wk, sa_wv, sa_wo,
    ca_wq, ca_wk, ca_wv, ca_wo,
    w1, w2, b1, vecs_ref,
    o_ref, *, n_heads: int,
):
    """One grid step = one decoder layer applied to a tile of Bt sequences.

    The output ref (same block index for every layer) carries the activations in
    VMEM across the inner "arbitrary" layer axis; HBM writeback happens only when
    the batch-tile block changes.
    """
    l = pl.program_id(1)
    Bt, S, D = x_ref.shape
    M = ctx_ref.shape[1]
    H = n_heads
    hd = D // H

    # Load the input activations into the carry once per batch tile (layer 0).
    @pl.when(l == 0)
    def _():
        o_ref[...] = x_ref[...]

    vecs = vecs_ref[0]                       # (15, D) f32: biases + LN params

    def row(i):
        return vecs[i:i + 1]                 # (1, D)

    def layer_norm(v, g_i, b_i):
        mu = jnp.mean(v, axis=-1, keepdims=True)
        ms = jnp.mean(v * v, axis=-1, keepdims=True)
        var = ms - mu * mu
        return (v - mu) * jax.lax.rsqrt(var + LN_EPS) * row(g_i) + row(b_i)

    def mha(q_src, kv_src, n_k, wq, wk, wv, wo, bq_i, bk_i, bv_i, bo_i, key_bias):
        # q_src: (Bt*S, D) bf16, kv_src: (Bt*n_k, D) bf16, key_bias: (Bt, 1, n_k) f32.
        # The 1/sqrt(hd) softmax scale is pre-folded into wq / bq by the wrapper.
        q = (jnp.dot(q_src, wq[0], preferred_element_type=jnp.float32)
             + row(bq_i)).astype(jnp.bfloat16).reshape(Bt, S, D)
        k = (jnp.dot(kv_src, wk[0], preferred_element_type=jnp.float32)
             + row(bk_i)).astype(jnp.bfloat16).reshape(Bt, n_k, D)
        v = (jnp.dot(kv_src, wv[0], preferred_element_type=jnp.float32)
             + row(bv_i)).astype(jnp.bfloat16).reshape(Bt, n_k, D)

        heads = []
        for h in range(H):                   # small static head count; einsums batched over Bt
            sl = slice(h * hd, (h + 1) * hd)
            s = jnp.einsum("bqd,bkd->bqk", q[:, :, sl], k[:, :, sl],
                           preferred_element_type=jnp.float32)          # (Bt, S, n_k)
            s = s + key_bias
            s = s - jnp.max(s, axis=-1, keepdims=True)
            p = jnp.exp(s)
            p = p * pl.reciprocal(jnp.sum(p, axis=-1, keepdims=True), approx=True)
            heads.append(jnp.einsum("bqk,bkd->bqd", p.astype(jnp.bfloat16), v[:, :, sl],
                                    preferred_element_type=jnp.float32))  # (Bt, S, hd)
        attn = jnp.concatenate(heads, axis=-1) if H > 1 else heads[0]     # (Bt, S, D) f32
        attn = attn.reshape(Bt * S, D).astype(jnp.bfloat16)
        # Single K=D out-projection with the bias folded into the epilogue.
        return jnp.dot(attn, wo[0], preferred_element_type=jnp.float32) + row(bo_i)

    x2d = o_ref[...].reshape(Bt * S, D)                                   # carried activations, f32
    x2d_bf = x2d.astype(jnp.bfloat16)
    ctx_bf = ctx_ref[...].reshape(Bt * M, D)                              # already bf16 (wrapper cast)

    # ---- self-attention block (dropout omitted: eval mode) ----
    sa = mha(x2d_bf, x2d_bf, S, sa_wq, sa_wk, sa_wv, sa_wo,
             SA_BQ, SA_BK, SA_BV, SA_BO, tkpm_ref[...])
    t = layer_norm(x2d + sa, R_G1, R_BE1)
    # ---- cross-attention block ----
    ca = mha(t.astype(jnp.bfloat16), ctx_bf, M, ca_wq, ca_wk, ca_wv, ca_wo,
             CA_BQ, CA_BK, CA_BV, CA_BO, mkpm_ref[...])
    t = layer_norm(t + ca, R_G2, R_BE2)
    # ---- feed-forward block (ReLU activation, PyTorch default) ----
    h1 = jnp.maximum(
        jnp.dot(t.astype(jnp.bfloat16), w1[0], preferred_element_type=jnp.float32) + b1[0],
        0.0)
    ff = jnp.dot(h1.astype(jnp.bfloat16), w2[0], preferred_element_type=jnp.float32) + row(R_B2)
    t = layer_norm(t + ff, R_G3, R_BE3)

    o_ref[...] = t.reshape(Bt, S, D)


def _build_masks(B, S, M, tgt_key_padding_mask, memory_key_padding_mask):
    if tgt_key_padding_mask is None:
        tkpm = jnp.zeros((B, 1, S), jnp.float32)
    else:
        tkpm = jnp.where(tgt_key_padding_mask, NEG_INF, 0.0).astype(jnp.float32).reshape(B, 1, S)
    if memory_key_padding_mask is None:
        mkpm = jnp.zeros((B, 1, M), jnp.float32)
    else:
        mkpm = jnp.where(memory_key_padding_mask, NEG_INF, 0.0).astype(jnp.float32).reshape(B, 1, M)
    return tkpm, mkpm


def _plan_tiling(B, S, M, D, FF, weight_bytes, batch_tile=None):
    """Pick the largest batch tile that fits VMEM (weights are re-streamed B/bt times),
    and a vmem_limit sized from the actual footprint rather than a hardcoded cap."""
    try:
        phys = int(pltpu.get_tpu_info().vmem_capacity_bytes)   # 128 MiB v5e/v6e, 64 MiB v7x
    except Exception:
        phys = 64 << 20                                        # conservative fallback
    budget = int(phys * 0.75)

    # per-batch-element cost: double-buffered IO tiles + rough in-kernel temporaries
    io = 2 * (S * D * 4 + M * D * 2 + (S + M) * 4 + S * D * 4)
    work = S * (24 * D + 12 * FF) + 8 * S * max(S, M)
    per_elem = io + work

    if batch_tile is not None:
        bt = batch_tile
    else:
        bt = 1
        for cand in range(1, B + 1):
            if B % cand:
                continue
            if 2 * weight_bytes + cand * per_elem + (4 << 20) <= budget:
                bt = cand
    need = 2 * weight_bytes + bt * per_elem + (8 << 20)
    vmem_limit = max(32 << 20, min(need, budget))
    return bt, vmem_limit


def transformer_decoder_forward(x, context, params, n_heads,
                                tgt_key_padding_mask=None,
                                memory_key_padding_mask=None,
                                batch_tile=None):
    """Pallas equivalent of TransformerDecoder.forward (get_tokens/first_token defaults)."""
    B, S, D = x.shape
    _, M, _ = context.shape
    L = params["sa_wq"].shape[0]
    FF = params["w1"].shape[-1]

    tkpm, mkpm = _build_masks(B, S, M, tgt_key_padding_mask, memory_key_padding_mask)
    ctx_bf = context.astype(jnp.bfloat16)   # cast once here: halves context DMA / VMEM

    big = [jnp.asarray(params[k], jnp.bfloat16) for k in _BIG_WEIGHTS]
    vecs = jnp.stack([params[k].reshape(L, D).astype(jnp.float32) for k in _VEC_ORDER], axis=1)
    b1 = params["b1"].astype(jnp.float32)

    weight_bytes = sum(math.prod(w.shape[1:]) * jnp.dtype(w.dtype).itemsize for w in big)
    weight_bytes += math.prod(vecs.shape[1:]) * 4 + FF * 4
    bt, vmem_limit = _plan_tiling(B, S, M, D, FF, weight_bytes, batch_tile)
    assert B % bt == 0

    data_map = lambda bb, l: (bb, 0, 0)
    weight_map = lambda bb, l: (l, 0, 0)

    in_specs = [
        pl.BlockSpec((bt, S, D), data_map),            # x (f32)
        pl.BlockSpec((bt, M, D), data_map),            # context (bf16)
        pl.BlockSpec((bt, 1, S), data_map),            # tgt key-padding bias
        pl.BlockSpec((bt, 1, M), data_map),            # mem key-padding bias
    ]
    in_specs += [pl.BlockSpec((1,) + w.shape[1:], weight_map) for w in big]
    in_specs += [
        pl.BlockSpec((1, 1, FF), weight_map),          # b1
        pl.BlockSpec((1, len(_VEC_ORDER), D), weight_map),  # packed biases / LN params
    ]

    return pl.pallas_call(
        functools.partial(_decoder_stack_kernel, n_heads=n_heads),
        out_shape=jax.ShapeDtypeStruct((B, S, D), jnp.float32),
        grid=(B // bt, L),
        in_specs=in_specs,
        out_specs=pl.BlockSpec((bt, S, D), data_map),
        compiler_params=pltpu.CompilerParams(
            dimension_semantics=("parallel", "arbitrary"),
            vmem_limit_bytes=vmem_limit,
        ),
    )(x, ctx_bf, tkpm, mkpm, *big, b1, vecs)


def init_params(key, n_layers, d_model, n_heads, dim_ff):
    """Synthetic parameters with the structure of nn.TransformerDecoderLayer.

    Weights are stored pre-transposed as (in, out); the packed in-proj is pre-split
    into q/k/v, the out-proj is a plain (D, D) matrix, the 1/sqrt(hd) softmax scale
    is folded into wq/bq, and all MXU weight operands are cast to bf16.
    """
    L, D, H, FF = n_layers, d_model, n_heads, dim_ff
    hd = D // H
    scale = 1.0 / math.sqrt(hd)
    keys = iter(jax.random.split(key, 32))

    def u(shape, fan_in):
        bound = 1.0 / math.sqrt(fan_in)
        return jax.random.uniform(next(keys), shape, jnp.float32, -bound, bound)

    p = {}
    for pre in ("sa", "ca"):
        p[f"{pre}_wq"] = u((L, D, D), D) * scale
        p[f"{pre}_wk"] = u((L, D, D), D)
        p[f"{pre}_wv"] = u((L, D, D), D)
        p[f"{pre}_bq"] = u((L, 1, D), D) * scale
        p[f"{pre}_bk"] = u((L, 1, D), D)
        p[f"{pre}_bv"] = u((L, 1, D), D)
        p[f"{pre}_wo"] = u((L, D, D), D)
        p[f"{pre}_bo"] = u((L, 1, D), D)
    p["w1"] = u((L, D, FF), D)
    p["b1"] = u((L, 1, FF), D)
    p["w2"] = u((L, FF, D), FF)
    p["b2"] = u((L, 1, D), FF)
    for i in (1, 2, 3):
        p[f"g{i}"] = jnp.ones((L, 1, D), jnp.float32)
        p[f"be{i}"] = jnp.zeros((L, 1, D), jnp.float32)
    # bf16 storage for MXU operands (halves HBM traffic and VMEM footprint).
    for name in _BIG_WEIGHTS:
        p[name] = p[name].astype(jnp.bfloat16)
    return p


def transformer_decoder_reference(x, context, params, n_heads,
                                  tgt_key_padding_mask=None,
                                  memory_key_padding_mask=None):
    """Pure-JAX f32 reference with identical math (no bf16 activations / approx recip)."""
    B, S, D = x.shape
    M = context.shape[1]
    H = n_heads
    hd = D // H
    L = params["sa_wq"].shape[0]
    tkpm, mkpm = _build_masks(B, S, M, tgt_key_padding_mask, memory_key_padding_mask)
    f32 = lambda a: a.astype(jnp.float32)

    def layer_norm(v, g, b):
        mu = jnp.mean(v, axis=-1, keepdims=True)
        var = jnp.mean(jnp.square(v - mu), axis=-1, keepdims=True)
        return (v - mu) * jax.lax.rsqrt(var + LN_EPS) * g + b

    def mha(q_in, kv_in, wq, wk, wv, bq, bk, bv, wo, bo, key_bias):
        q = q_in @ f32(wq) + bq
        k = kv_in @ f32(wk) + bk
        v = kv_in @ f32(wv) + bv
        heads = []
        for h in range(H):
            sl = slice(h * hd, (h + 1) * hd)
            s = jnp.einsum("bqd,bkd->bqk", q[..., sl], k[..., sl]) + key_bias
            p = jax.nn.softmax(s, axis=-1)
            heads.append(jnp.einsum("bqk,bkd->bqd", p, v[..., sl]))
        return jnp.concatenate(heads, axis=-1) @ f32(wo) + bo

    t = x
    for l in range(L):
        sa = mha(t, t,
                 params["sa_wq"][l], params["sa_wk"][l], params["sa_wv"][l],
                 params["sa_bq"][l], params["sa_bk"][l], params["sa_bv"][l],
                 params["sa_wo"][l], params["sa_bo"][l], tkpm)
        t = layer_norm(t + sa, params["g1"][l], params["be1"][l])
        ca = mha(t, context,
                 params["ca_wq"][l], params["ca_wk"][l], params["ca_wv"][l],
                 params["ca_bq"][l], params["ca_bk"][l], params["ca_bv"][l],
                 params["ca_wo"][l], params["ca_bo"][l], mkpm)
        t = layer_norm(t + ca, params["g2"][l], params["be2"][l])
        h1 = jnp.maximum(t @ f32(params["w1"][l]) + params["b1"][l], 0.0)
        ff = h1 @ f32(params["w2"][l]) + params["b2"][l]
        t = layer_norm(t + ff, params["g3"][l], params["be3"][l])
    return t


if __name__ == "__main__":
    # small shapes consistent with the module (dim_in -> 32, n_heads=2, n_layers=2)
    B, S_TGT, S_MEM, D, H, FF, N_LAYERS = 2, 8, 8, 32, 2, 64, 2

    key = jax.random.PRNGKey(0)
    kx, kc, kp = jax.random.split(key, 3)
    x = jax.random.normal(kx, (B, S_TGT, D), jnp.float32)
    context = jax.random.normal(kc, (B, S_MEM, D), jnp.float32)
    params = init_params(kp, N_LAYERS, D, H, FF)

    # key-padding mask on memory: last two memory positions of batch element 1 are padding
    mem_mask = jnp.zeros((B, S_MEM), jnp.bool_).at[1, -2:].set(True)

    out = transformer_decoder_forward(x, context, params, n_heads=H,
                                      memory_key_padding_mask=mem_mask)
    out = jax.block_until_ready(out)
    assert out.shape == (B, S_TGT, D) and out.dtype == jnp.float32
    assert bool(jnp.all(jnp.isfinite(out)))

    ref = transformer_decoder_reference(x, context, params, n_heads=H,
                                        memory_key_padding_mask=mem_mask)
    max_err = float(jnp.max(jnp.abs(out - ref)))
    assert max_err < 0.2, f"kernel/reference mismatch: max abs err {max_err}"

    print("KERNEL_OK")
</pallas_src>

<mosaic_0001>
module attributes {stable_mosaic.version = 11 : i64} {
  func.func @_decoder_stack_kernel(%arg0: i32, %arg1: i32, %arg2: memref<2x8x32xf32, #tpu.memory_space<vmem>>, %arg3: memref<2x8x32xbf16, #tpu.memory_space<vmem>>, %arg4: memref<2x1x8xf32, #tpu.memory_space<vmem>>, %arg5: memref<2x1x8xf32, #tpu.memory_space<vmem>>, %arg6: memref<1x32x32xbf16, #tpu.memory_space<vmem>>, %arg7: memref<1x32x32xbf16, #tpu.memory_space<vmem>>, %arg8: memref<1x32x32xbf16, #tpu.memory_space<vmem>>, %arg9: memref<1x32x32xbf16, #tpu.memory_space<vmem>>, %arg10: memref<1x32x32xbf16, #tpu.memory_space<vmem>>, %arg11: memref<1x32x32xbf16, #tpu.memory_space<vmem>>, %arg12: memref<1x32x32xbf16, #tpu.memory_space<vmem>>, %arg13: memref<1x32x32xbf16, #tpu.memory_space<vmem>>, %arg14: memref<1x32x64xbf16, #tpu.memory_space<vmem>>, %arg15: memref<1x64x32xbf16, #tpu.memory_space<vmem>>, %arg16: memref<1x1x64xf32, #tpu.memory_space<vmem>>, %arg17: memref<1x15x32xf32, #tpu.memory_space<vmem>>, %arg18: memref<2x8x32xf32, #tpu.memory_space<vmem>>) attributes {dimension_semantics = [#tpu.dimension_semantics<parallel>, #tpu.dimension_semantics<arbitrary>], iteration_bounds = array<i64: 1, 2>, scalar_prefetch = 0 : i64, scratch_operands = 0 : i64, tpu.core_type = #tpu.core_type<tc>, window_params = [{transform_indices = @transform_0, window_bounds = array<i64: 2, 8, 32>}, {transform_indices = @transform_1, window_bounds = array<i64: 2, 8, 32>}, {transform_indices = @transform_2, window_bounds = array<i64: 2, 1, 8>}, {transform_indices = @transform_3, window_bounds = array<i64: 2, 1, 8>}, {transform_indices = @transform_4, window_bounds = array<i64: 1, 32, 32>}, {transform_indices = @transform_5, window_bounds = array<i64: 1, 32, 32>}, {transform_indices = @transform_6, window_bounds = array<i64: 1, 32, 32>}, {transform_indices = @transform_7, window_bounds = array<i64: 1, 32, 32>}, {transform_indices = @transform_8, window_bounds = array<i64: 1, 32, 32>}, {transform_indices = @transform_9, window_bounds = array<i64: 1, 32, 32>}, {transform_indices = @transform_10, window_bounds = array<i64: 1, 32, 32>}, {transform_indices = @transform_11, window_bounds = array<i64: 1, 32, 32>}, {transform_indices = @transform_12, window_bounds = array<i64: 1, 32, 64>}, {transform_indices = @transform_13, window_bounds = array<i64: 1, 64, 32>}, {transform_indices = @transform_14, window_bounds = array<i64: 1, 1, 64>}, {transform_indices = @transform_15, window_bounds = array<i64: 1, 15, 32>}, {transform_indices = @transform_16, window_bounds = array<i64: 2, 8, 32>}]} {
    %c0_i32 = arith.constant 0 : i32
    %0 = arith.cmpi eq, %arg1, %c0_i32 : i32
    %1 = arith.extui %0 : i1 to i32
    %c0_i32_0 = arith.constant 0 : i32
    %2 = arith.cmpi ne, %1, %c0_i32_0 : i32
    scf.if %2 {
      %c0_92 = arith.constant 0 : index
      %c0_93 = arith.constant 0 : index
      %c0_94 = arith.constant 0 : index
      %245 = vector.load %arg2[%c0_92, %c0_93, %c0_94] : memref<2x8x32xf32, #tpu.memory_space<vmem>>, vector<2x8x32xf32>
      %c0_95 = arith.constant 0 : index
      %c0_96 = arith.constant 0 : index
      %c0_97 = arith.constant 0 : index
      %246 = vector.load %arg18[%c0_95, %c0_96, %c0_97] : memref<2x8x32xf32, #tpu.memory_space<vmem>>, vector<2x8x32xf32>
      tpu.vector_store %arg18[%c0_95, %c0_96, %c0_97], %245 {strides = array<i32>} : memref<2x8x32xf32, #tpu.memory_space<vmem>>, vector<2x8x32xf32>,
    } else {
    }
    %c0 = arith.constant 0 : index
    %c0_1 = arith.constant 0 : index
    %c0_2 = arith.constant 0 : index
    %3 = vector.load %arg17[%c0, %c0_1, %c0_2] : memref<1x15x32xf32, #tpu.memory_space<vmem>>, vector<1x15x32xf32>
    %4 = vector.shape_cast %3 : vector<1x15x32xf32> to vector<15x32xf32>
    %c0_3 = arith.constant 0 : index
    %c0_4 = arith.constant 0 : index
    %c0_5 = arith.constant 0 : index
    %5 = vector.load %arg18[%c0_3, %c0_4, %c0_5] : memref<2x8x32xf32, #tpu.memory_space<vmem>>, vector<2x8x32xf32>
    %6 = vector.shape_cast %5 : vector<2x8x32xf32> to vector<16x32xf32>
    %7 = arith.truncf %6 : vector<16x32xf32> to vector<16x32xbf16>
    %c0_6 = arith.constant 0 : index
    %c0_7 = arith.constant 0 : index
    %c0_8 = arith.constant 0 : index
    %8 = vector.load %arg3[%c0_6, %c0_7, %c0_8] : memref<2x8x32xbf16, #tpu.memory_space<vmem>>, vector<2x8x32xbf16>
    %9 = vector.shape_cast %8 : vector<2x8x32xbf16> to vector<16x32xbf16>
    %c0_9 = arith.constant 0 : index
    %c0_10 = arith.constant 0 : index
    %c0_11 = arith.constant 0 : index
    %10 = vector.load %arg4[%c0_9, %c0_10, %c0_11] : memref<2x1x8xf32, #tpu.memory_space<vmem>>, vector<2x1x8xf32>
    %c0_12 = arith.constant 0 : index
    %c0_13 = arith.constant 0 : index
    %c0_14 = arith.constant 0 : index
    %11 = vector.load %arg6[%c0_12, %c0_13, %c0_14] : memref<1x32x32xbf16, #tpu.memory_space<vmem>>, vector<1x32x32xbf16>
    %12 = vector.shape_cast %11 : vector<1x32x32xbf16> to vector<32x32xbf16>
    %cst = arith.constant dense<0.000000e+00> : vector<16x32xf32>
    %13 = tpu.matmul %7, %12, %cst {dimension_numbers = #tpu.dot_dimension_numbers<[1], [0], [0], [1], [0, 0, 1, 1], [], []>} : vector<16x32xbf16>, vector<32x32xbf16>, vector<16x32xf32> -> vector<16x32xf32>
    %14 = vector.extract_strided_slice %4 {offsets = [0, 0], sizes = [1, 32], strides = [1, 1]} : vector<15x32xf32> to vector<1x32xf32>
    %15 = vector.broadcast %14 : vector<1x32xf32> to vector<16x32xf32>
    %16 = arith.addf %13, %15 : vector<16x32xf32>
    %17 = arith.truncf %16 : vector<16x32xf32> to vector<16x32xbf16>
    %18 = vector.shape_cast %17 : vector<16x32xbf16> to vector<2x8x32xbf16>
    %c0_15 = arith.constant 0 : index
    %c0_16 = arith.constant 0 : index
    %c0_17 = arith.constant 0 : index
    %19 = vector.load %arg7[%c0_15, %c0_16, %c0_17] : memref<1x32x32xbf16, #tpu.memory_space<vmem>>, vector<1x32x32xbf16>
    %20 = vector.shape_cast %19 : vector<1x32x32xbf16> to vector<32x32xbf16>
    %cst_18 = arith.constant dense<0.000000e+00> : vector<16x32xf32>
    %21 = tpu.matmul %7, %20, %cst_18 {dimension_numbers = #tpu.dot_dimension_numbers<[1], [0], [0], [1], [0, 0, 1, 1], [], []>} : vector<16x32xbf16>, vector<32x32xbf16>, vector<16x32xf32> -> vector<16x32xf32>
    %22 = vector.extract_strided_slice %4 {offsets = [1, 0], sizes = [1, 32], strides = [1, 1]} : vector<15x32xf32> to vector<1x32xf32>
    %23 = vector.broadcast %22 : vector<1x32xf32> to vector<16x32xf32>
    %24 = arith.addf %21, %23 : vector<16x32xf32>
    %25 = arith.truncf %24 : vector<16x32xf32> to vector<16x32xbf16>
    %26 = vector.shape_cast %25 : vector<16x32xbf16> to vector<2x8x32xbf16>
    %c0_19 = arith.constant 0 : index
    %c0_20 = arith.constant 0 : index
    %c0_21 = arith.constant 0 : index
    %27 = vector.load %arg8[%c0_19, %c0_20, %c0_21] : memref<1x32x32xbf16, #tpu.memory_space<vmem>>, vector<1x32x32xbf16>
    %28 = vector.shape_cast %27 : vector<1x32x32xbf16> to vector<32x32xbf16>
    %cst_22 = arith.constant dense<0.000000e+00> : vector<16x32xf32>
    %29 = tpu.matmul %7, %28, %cst_22 {dimension_numbers = #tpu.dot_dimension_numbers<[1], [0], [0], [1], [0, 0, 1, 1], [], []>} : vector<16x32xbf16>, vector<32x32xbf16>, vector<16x32xf32> -> vector<16x32xf32>
    %30 = vector.extract_strided_slice %4 {offsets = [2, 0], sizes = [1, 32], strides = [1, 1]} : vector<15x32xf32> to vector<1x32xf32>
    %31 = vector.broadcast %30 : vector<1x32xf32> to vector<16x32xf32>
    %32 = arith.addf %29, %31 : vector<16x32xf32>
    %33 = arith.truncf %32 : vector<16x32xf32> to vector<16x32xbf16>
    %34 = vector.shape_cast %33 : vector<16x32xbf16> to vector<2x8x32xbf16>
    %35 = vector.extract_strided_slice %18 {offsets = [0, 0, 0], sizes = [2, 8, 16], strides = [1, 1, 1]} : vector<2x8x32xbf16> to vector<2x8x16xbf16>
    %36 = vector.extract_strided_slice %26 {offsets = [0, 0, 0], sizes = [2, 8, 16], strides = [1, 1, 1]} : vector<2x8x32xbf16> to vector<2x8x16xbf16>
    "tpu.trace_start"() <{level = 10 : i32, message = "bqd,bkd->bqk"}> : () -> ()
    %cst_23 = arith.constant dense<0.000000e+00> : vector<2x8x8xf32>
    %37 = tpu.matmul %35, %36, %cst_23 {dimension_numbers = #tpu.dot_dimension_numbers<[2], [2], [1], [1], [0, 0, 0, 1, 1, 1], [0], [0]>} : vector<2x8x16xbf16>, vector<2x8x16xbf16>, vector<2x8x8xf32> -> vector<2x8x8xf32>
    "tpu.trace_stop"() : () -> ()
    %38 = vector.broadcast %10 : vector<2x1x8xf32> to vector<2x8x8xf32>
    %39 = arith.addf %37, %38 : vector<2x8x8xf32>
    %cst_24 = arith.constant dense<0xFF800000> : vector<2x8xf32>
    %40 = vector.multi_reduction <maximumf>, %39, %cst_24 [2] : vector<2x8x8xf32> to vector<2x8xf32>
    %41 = vector.shape_cast %40 : vector<2x8xf32> to vector<2x8x1xf32>
    %42 = vector.broadcast %41 : vector<2x8x1xf32> to vector<2x8x8xf32>
    %43 = arith.subf %39, %42 : vector<2x8x8xf32>
    %44 = math.exp %43 : vector<2x8x8xf32>
    %cst_25 = arith.constant dense<0.000000e+00> : vector<2x8xf32>
    %45 = vector.multi_reduction <add>, %44, %cst_25 [2] : vector<2x8x8xf32> to vector<2x8xf32>
    %46 = vector.shape_cast %45 : vector<2x8xf32> to vector<2x8x1xf32>
    %47 = tpu.reciprocal %46 {approx = true} : vector<2x8x1xf32> -> vector<2x8x1xf32>
    %48 = vector.broadcast %47 : vector<2x8x1xf32> to vector<2x8x8xf32>
    %49 = arith.mulf %44, %48 : vector<2x8x8xf32>
    %50 = arith.truncf %49 : vector<2x8x8xf32> to vector<2x8x8xbf16>
    %51 = vector.extract_strided_slice %34 {offsets = [0, 0, 0], sizes = [2, 8, 16], strides = [1, 1, 1]} : vector<2x8x32xbf16> to vector<2x8x16xbf16>
    "tpu.trace_start"() <{level = 10 : i32, message = "bqk,bkd->bqd"}> : () -> ()
    %cst_26 = arith.constant dense<0.000000e+00> : vector<2x8x16xf32>
    %52 = tpu.matmul %50, %51, %cst_26 {dimension_numbers = #tpu.dot_dimension_numbers<[2], [1], [1], [2], [0, 0, 0, 1, 1, 2], [0], [0]>} : vector<2x8x8xbf16>, vector<2x8x16xbf16>, vector<2x8x16xf32> -> vector<2x8x16xf32>
    "tpu.trace_stop"() : () -> ()
    %53 = vector.extract_strided_slice %18 {offsets = [0, 0, 16], sizes = [2, 8, 16], strides = [1, 1, 1]} : vector<2x8x32xbf16> to vector<2x8x16xbf16>
    %54 = vector.extract_strided_slice %26 {offsets = [0, 0, 16], sizes = [2, 8, 16], strides = [1, 1, 1]} : vector<2x8x32xbf16> to vector<2x8x16xbf16>
    "tpu.trace_start"() <{level = 10 : i32, message = "bqd,bkd->bqk"}> : () -> ()
    %cst_27 = arith.constant dense<0.000000e+00> : vector<2x8x8xf32>
    %55 = tpu.matmul %53, %54, %cst_27 {dimension_numbers = #tpu.dot_dimension_numbers<[2], [2], [1], [1], [0, 0, 0, 1, 1, 1], [0], [0]>} : vector<2x8x16xbf16>, vector<2x8x16xbf16>, vector<2x8x8xf32> -> vector<2x8x8xf32>
    "tpu.trace_stop"() : () -> ()
    %56 = vector.broadcast %10 : vector<2x1x8xf32> to vector<2x8x8xf32>
    %57 = arith.addf %55, %56 : vector<2x8x8xf32>
    %cst_28 = arith.constant dense<0xFF800000> : vector<2x8xf32>
    %58 = vector.multi_reduction <maximumf>, %57, %cst_28 [2] : vector<2x8x8xf32> to vector<2x8xf32>
    %59 = vector.shape_cast %58 : vector<2x8xf32> to vector<2x8x1xf32>
    %60 = vector.broadcast %59 : vector<2x8x1xf32> to vector<2x8x8xf32>
    %61 = arith.subf %57, %60 : vector<2x8x8xf32>
    %62 = math.exp %61 : vector<2x8x8xf32>
    %cst_29 = arith.constant dense<0.000000e+00> : vector<2x8xf32>
    %63 = vector.multi_reduction <add>, %62, %cst_29 [2] : vector<2x8x8xf32> to vector<2x8xf32>
    %64 = vector.shape_cast %63 : vector<2x8xf32> to vector<2x8x1xf32>
    %65 = tpu.reciprocal %64 {approx = true} : vector<2x8x1xf32> -> vector<2x8x1xf32>
    %66 = vector.broadcast %65 : vector<2x8x1xf32> to vector<2x8x8xf32>
    %67 = arith.mulf %62, %66 : vector<2x8x8xf32>
    %68 = arith.truncf %67 : vector<2x8x8xf32> to vector<2x8x8xbf16>
    %69 = vector.extract_strided_slice %34 {offsets = [0, 0, 16], sizes = [2, 8, 16], strides = [1, 1, 1]} : vector<2x8x32xbf16> to vector<2x8x16xbf16>
    "tpu.trace_start"() <{level = 10 : i32, message = "bqk,bkd->bqd"}> : () -> ()
    %cst_30 = arith.constant dense<0.000000e+00> : vector<2x8x16xf32>
    %70 = tpu.matmul %68, %69, %cst_30 {dimension_numbers = #tpu.dot_dimension_numbers<[2], [1], [1], [2], [0, 0, 0, 1, 1, 2], [0], [0]>} : vector<2x8x8xbf16>, vector<2x8x16xbf16>, vector<2x8x16xf32> -> vector<2x8x16xf32>
    "tpu.trace_stop"() : () -> ()
    %71 = tpu.concatenate %52, %70 in 2 : vector<2x8x16xf32>, vector<2x8x16xf32> -> vector<2x8x32xf32>
    %72 = vector.shape_cast %71 : vector<2x8x32xf32> to vector<16x32xf32>
    %73 = arith.truncf %72 : vector<16x32xf32> to vector<16x32xbf16>
    %c0_31 = arith.constant 0 : index
    %c0_32 = arith.constant 0 : index
    %c0_33 = arith.constant 0 : index
    %74 = vector.load %arg9[%c0_31, %c0_32, %c0_33] : memref<1x32x32xbf16, #tpu.memory_space<vmem>>, vector<1x32x32xbf16>
    %75 = vector.shape_cast %74 : vector<1x32x32xbf16> to vector<32x32xbf16>
    %cst_34 = arith.constant dense<0.000000e+00> : vector<16x32xf32>
    %76 = tpu.matmul %73, %75, %cst_34 {dimension_numbers = #tpu.dot_dimension_numbers<[1], [0], [0], [1], [0, 0, 1, 1], [], []>} : vector<16x32xbf16>, vector<32x32xbf16>, vector<16x32xf32> -> vector<16x32xf32>
    %77 = vector.extract_strided_slice %4 {offsets = [3, 0], sizes = [1, 32], strides = [1, 1]} : vector<15x32xf32> to vector<1x32xf32>
    %78 = vector.broadcast %77 : vector<1x32xf32> to vector<16x32xf32>
    %79 = arith.addf %76, %78 : vector<16x32xf32>
    %80 = arith.addf %6, %79 : vector<16x32xf32>
    %cst_35 = arith.constant dense<0.000000e+00> : vector<16xf32>
    %81 = vector.multi_reduction <add>, %80, %cst_35 [1] : vector<16x32xf32> to vector<16xf32>
    %82 = vector.shape_cast %81 : vector<16xf32> to vector<16x1xf32>
    %cst_36 = arith.constant 3.200000e+01 : f32
    %83 = vector.broadcast %cst_36 : f32 to vector<16x1xf32>
    %84 = arith.divf %82, %83 : vector<16x1xf32>
    %85 = arith.mulf %80, %80 : vector<16x32xf32>
    %cst_37 = arith.constant dense<0.000000e+00> : vector<16xf32>
    %86 = vector.multi_reduction <add>, %85, %cst_37 [1] : vector<16x32xf32> to vector<16xf32>
    %87 = vector.shape_cast %86 : vector<16xf32> to vector<16x1xf32>
    %cst_38 = arith.constant 3.200000e+01 : f32
    %88 = vector.broadcast %cst_38 : f32 to vector<16x1xf32>
    %89 = arith.divf %87, %88 : vector<16x1xf32>
    %90 = arith.mulf %84, %84 : vector<16x1xf32>
    %91 = arith.subf %89, %90 : vector<16x1xf32>
    %92 = vector.broadcast %84 : vector<16x1xf32> to vector<16x32xf32>
    %93 = arith.subf %80, %92 : vector<16x32xf32>
    %cst_39 = arith.constant 9.99999974E-6 : f32
    %94 = vector.broadcast %cst_39 : f32 to vector<16x1xf32>
    %95 = arith.addf %91, %94 : vector<16x1xf32>
    %96 = math.rsqrt %95 : vector<16x1xf32>
    %97 = vector.broadcast %96 : vector<16x1xf32> to vector<16x32xf32>
    %98 = arith.mulf %93, %97 : vector<16x32xf32>
    %99 = vector.extract_strided_slice %4 {offsets = [9, 0], sizes = [1, 32], strides = [1, 1]} : vector<15x32xf32> to vector<1x32xf32>
    %100 = vector.broadcast %99 : vector<1x32xf32> to vector<16x32xf32>
    %101 = arith.mulf %98, %100 : vector<16x32xf32>
    %102 = vector.extract_strided_slice %4 {offsets = [10, 0], sizes = [1, 32], strides = [1, 1]} : vector<15x32xf32> to vector<1x32xf32>
    %103 = vector.broadcast %102 : vector<1x32xf32> to vector<16x32xf32>
    %104 = arith.addf %101, %103 : vector<16x32xf32>
    %105 = arith.truncf %104 : vector<16x32xf32> to vector<16x32xbf16>
    %c0_40 = arith.constant 0 : index
    %c0_41 = arith.constant 0 : index
    %c0_42 = arith.constant 0 : index
    %106 = vector.load %arg5[%c0_40, %c0_41, %c0_42] : memref<2x1x8xf32, #tpu.memory_space<vmem>>, vector<2x1x8xf32>
    %c0_43 = arith.constant 0 : index
    %c0_44 = arith.constant 0 : index
    %c0_45 = arith.constant 0 : index
    %107 = vector.load %arg10[%c0_43, %c0_44, %c0_45] : memref<1x32x32xbf16, #tpu.memory_space<vmem>>, vector<1x32x32xbf16>
    %108 = vector.shape_cast %107 : vector<1x32x32xbf16> to vector<32x32xbf16>
    %cst_46 = arith.constant dense<0.000000e+00> : vector<16x32xf32>
    %109 = tpu.matmul %105, %108, %cst_46 {dimension_numbers = #tpu.dot_dimension_numbers<[1], [0], [0], [1], [0, 0, 1, 1], [], []>} : vector<16x32xbf16>, vector<32x32xbf16>, vector<16x32xf32> -> vector<16x32xf32>
    %110 = vector.extract_strided_slice %4 {offsets = [4, 0], sizes = [1, 32], strides = [1, 1]} : vector<15x32xf32> to vector<1x32xf32>
    %111 = vector.broadcast %110 : vector<1x32xf32> to vector<16x32xf32>
    %112 = arith.addf %109, %111 : vector<16x32xf32>
    %113 = arith.truncf %112 : vector<16x32xf32> to vector<16x32xbf16>
    %114 = vector.shape_cast %113 : vector<16x32xbf16> to vector<2x8x32xbf16>
    %c0_47 = arith.constant 0 : index
    %c0_48 = arith.constant 0 : index
    %c0_49 = arith.constant 0 : index
    %115 = vector.load %arg11[%c0_47, %c0_48, %c0_49] : memref<1x32x32xbf16, #tpu.memory_space<vmem>>, vector<1x32x32xbf16>
    %116 = vector.shape_cast %115 : vector<1x32x32xbf16> to vector<32x32xbf16>
    %cst_50 = arith.constant dense<0.000000e+00> : vector<16x32xf32>
    %117 = tpu.matmul %9, %116, %cst_50 {dimension_numbers = #tpu.dot_dimension_numbers<[1], [0], [0], [1], [0, 0, 1, 1], [], []>} : vector<16x32xbf16>, vector<32x32xbf16>, vector<16x32xf32> -> vector<16x32xf32>
    %118 = vector.extract_strided_slice %4 {offsets = [5, 0], sizes = [1, 32], strides = [1, 1]} : vector<15x32xf32> to vector<1x32xf32>
    %119 = vector.broadcast %118 : vector<1x32xf32> to vector<16x32xf32>
    %120 = arith.addf %117, %119 : vector<16x32xf32>
    %121 = arith.truncf %120 : vector<16x32xf32> to vector<16x32xbf16>
    %122 = vector.shape_cast %121 : vector<16x32xbf16> to vector<2x8x32xbf16>
    %c0_51 = arith.constant 0 : index
    %c0_52 = arith.constant 0 : index
    %c0_53 = arith.constant 0 : index
    %123 = vector.load %arg12[%c0_51, %c0_52, %c0_53] : memref<1x32x32xbf16, #tpu.memory_space<vmem>>, vector<1x32x32xbf16>
    %124 = vector.shape_cast %123 : vector<1x32x32xbf16> to vector<32x32xbf16>
    %cst_54 = arith.constant dense<0.000000e+00> : vector<16x32xf32>
    %125 = tpu.matmul %9, %124, %cst_54 {dimension_numbers = #tpu.dot_dimension_numbers<[1], [0], [0], [1], [0, 0, 1, 1], [], []>} : vector<16x32xbf16>, vector<32x32xbf16>, vector<16x32xf32> -> vector<16x32xf32>
    %126 = vector.extract_strided_slice %4 {offsets = [6, 0], sizes = [1, 32], strides = [1, 1]} : vector<15x32xf32> to vector<1x32xf32>
    %127 = vector.broadcast %126 : vector<1x32xf32> to vector<16x32xf32>
    %128 = arith.addf %125, %127 : vector<16x32xf32>
    %129 = arith.truncf %128 : vector<16x32xf32> to vector<16x32xbf16>
    %130 = vector.shape_cast %129 : vector<16x32xbf16> to vector<2x8x32xbf16>
    %131 = vector.extract_strided_slice %114 {offsets = [0, 0, 0], sizes = [2, 8, 16], strides = [1, 1, 1]} : vector<2x8x32xbf16> to vector<2x8x16xbf16>
    %132 = vector.extract_strided_slice %122 {offsets = [0, 0, 0], sizes = [2, 8, 16], strides = [1, 1, 1]} : vector<2x8x32xbf16> to vector<2x8x16xbf16>
    "tpu.trace_start"() <{level = 10 : i32, message = "bqd,bkd->bqk"}> : () -> ()
    %cst_55 = arith.constant dense<0.000000e+00> : vector<2x8x8xf32>
    %133 = tpu.matmul %131, %132, %cst_55 {dimension_numbers = #tpu.dot_dimension_numbers<[2], [2], [1], [1], [0, 0, 0, 1, 1, 1], [0], [0]>} : vector<2x8x16xbf16>, vector<2x8x16xbf16>, vector<2x8x8xf32> -> vector<2x8x8xf32>
    "tpu.trace_stop"() : () -> ()
    %134 = vector.broadcast %106 : vector<2x1x8xf32> to vector<2x8x8xf32>
    %135 = arith.addf %133, %134 : vector<2x8x8xf32>
    %cst_56 = arith.constant dense<0xFF800000> : vector<2x8xf32>
    %136 = vector.multi_reduction <maximumf>, %135, %cst_56 [2] : vector<2x8x8xf32> to vector<2x8xf32>
    %137 = vector.shape_cast %136 : vector<2x8xf32> to vector<2x8x1xf32>
    %138 = vector.broadcast %137 : vector<2x8x1xf32> to vector<2x8x8xf32>
    %139 = arith.subf %135, %138 : vector<2x8x8xf32>
    %140 = math.exp %139 : vector<2x8x8xf32>
    %cst_57 = arith.constant dense<0.000000e+00> : vector<2x8xf32>
    %141 = vector.multi_reduction <add>, %140, %cst_57 [2] : vector<2x8x8xf32> to vector<2x8xf32>
    %142 = vector.shape_cast %141 : vector<2x8xf32> to vector<2x8x1xf32>
    %143 = tpu.reciprocal %142 {approx = true} : vector<2x8x1xf32> -> vector<2x8x1xf32>
    %144 = vector.broadcast %143 : vector<2x8x1xf32> to vector<2x8x8xf32>
    %145 = arith.mulf %140, %144 : vector<2x8x8xf32>
    %146 = arith.truncf %145 : vector<2x8x8xf32> to vector<2x8x8xbf16>
    %147 = vector.extract_strided_slice %130 {offsets = [0, 0, 0], sizes = [2, 8, 16], strides = [1, 1, 1]} : vector<2x8x32xbf16> to vector<2x8x16xbf16>
    "tpu.trace_start"() <{level = 10 : i32, message = "bqk,bkd->bqd"}> : () -> ()
    %cst_58 = arith.constant dense<0.000000e+00> : vector<2x8x16xf32>
    %148 = tpu.matmul %146, %147, %cst_58 {dimension_numbers = #tpu.dot_dimension_numbers<[2], [1], [1], [2], [0, 0, 0, 1, 1, 2], [0], [0]>} : vector<2x8x8xbf16>, vector<2x8x16xbf16>, vector<2x8x16xf32> -> vector<2x8x16xf32>
    "tpu.trace_stop"() : () -> ()
    %149 = vector.extract_strided_slice %114 {offsets = [0, 0, 16], sizes = [2, 8, 16], strides = [1, 1, 1]} : vector<2x8x32xbf16> to vector<2x8x16xbf16>
    %150 = vector.extract_strided_slice %122 {offsets = [0, 0, 16], sizes = [2, 8, 16], strides = [1, 1, 1]} : vector<2x8x32xbf16> to vector<2x8x16xbf16>
    "tpu.trace_start"() <{level = 10 : i32, message = "bqd,bkd->bqk"}> : () -> ()
    %cst_59 = arith.constant dense<0.000000e+00> : vector<2x8x8xf32>
    %151 = tpu.matmul %149, %150, %cst_59 {dimension_numbers = #tpu.dot_dimension_numbers<[2], [2], [1], [1], [0, 0, 0, 1, 1, 1], [0], [0]>} : vector<2x8x16xbf16>, vector<2x8x16xbf16>, vector<2x8x8xf32> -> vector<2x8x8xf32>
    "tpu.trace_stop"() : () -> ()
    %152 = vector.broadcast %106 : vector<2x1x8xf32> to vector<2x8x8xf32>
    %153 = arith.addf %151, %152 : vector<2x8x8xf32>
    %cst_60 = arith.constant dense<0xFF800000> : vector<2x8xf32>
    %154 = vector.multi_reduction <maximumf>, %153, %cst_60 [2] : vector<2x8x8xf32> to vector<2x8xf32>
    %155 = vector.shape_cast %154 : vector<2x8xf32> to vector<2x8x1xf32>
    %156 = vector.broadcast %155 : vector<2x8x1xf32> to vector<2x8x8xf32>
    %157 = arith.subf %153, %156 : vector<2x8x8xf32>
    %158 = math.exp %157 : vector<2x8x8xf32>
    %cst_61 = arith.constant dense<0.000000e+00> : vector<2x8xf32>
    %159 = vector.multi_reduction <add>, %158, %cst_61 [2] : vector<2x8x8xf32> to vector<2x8xf32>
    %160 = vector.shape_cast %159 : vector<2x8xf32> to vector<2x8x1xf32>
    %161 = tpu.reciprocal %160 {approx = true} : vector<2x8x1xf32> -> vector<2x8x1xf32>
    %162 = vector.broadcast %161 : vector<2x8x1xf32> to vector<2x8x8xf32>
    %163 = arith.mulf %158, %162 : vector<2x8x8xf32>
    %164 = arith.truncf %163 : vector<2x8x8xf32> to vector<2x8x8xbf16>
    %165 = vector.extract_strided_slice %130 {offsets = [0, 0, 16], sizes = [2, 8, 16], strides = [1, 1, 1]} : vector<2x8x32xbf16> to vector<2x8x16xbf16>
    "tpu.trace_start"() <{level = 10 : i32, message = "bqk,bkd->bqd"}> : () -> ()
    %cst_62 = arith.constant dense<0.000000e+00> : vector<2x8x16xf32>
    %166 = tpu.matmul %164, %165, %cst_62 {dimension_numbers = #tpu.dot_dimension_numbers<[2], [1], [1], [2], [0, 0, 0, 1, 1, 2], [0], [0]>} : vector<2x8x8xbf16>, vector<2x8x16xbf16>, vector<2x8x16xf32> -> vector<2x8x16xf32>
    "tpu.trace_stop"() : () -> ()
    %167 = tpu.concatenate %148, %166 in 2 : vector<2x8x16xf32>, vector<2x8x16xf32> -> vector<2x8x32xf32>
    %168 = vector.shape_cast %167 : vector<2x8x32xf32> to vector<16x32xf32>
    %169 = arith.truncf %168 : vector<16x32xf32> to vector<16x32xbf16>
    %c0_63 = arith.constant 0 : index
    %c0_64 = arith.constant 0 : index
    %c0_65 = arith.constant 0 : index
    %170 = vector.load %arg13[%c0_63, %c0_64, %c0_65] : memref<1x32x32xbf16, #tpu.memory_space<vmem>>, vector<1x32x32xbf16>
    %171 = vector.shape_cast %170 : vector<1x32x32xbf16> to vector<32x32xbf16>
    %cst_66 = arith.constant dense<0.000000e+00> : vector<16x32xf32>
    %172 = tpu.matmul %169, %171, %cst_66 {dimension_numbers = #tpu.dot_dimension_numbers<[1], [0], [0], [1], [0, 0, 1, 1], [], []>} : vector<16x32xbf16>, vector<32x32xbf16>, vector<16x32xf32> -> vector<16x32xf32>
    %173 = vector.extract_strided_slice %4 {offsets = [7, 0], sizes = [1, 32], strides = [1, 1]} : vector<15x32xf32> to vector<1x32xf32>
    %174 = vector.broadcast %173 : vector<1x32xf32> to vector<16x32xf32>
    %175 = arith.addf %172, %174 : vector<16x32xf32>
    %176 = arith.addf %104, %175 : vector<16x32xf32>
    %cst_67 = arith.constant dense<0.000000e+00> : vector<16xf32>
    %177 = vector.multi_reduction <add>, %176, %cst_67 [1] : vector<16x32xf32> to vector<16xf32>
    %178 = vector.shape_cast %177 : vector<16xf32> to vector<16x1xf32>
    %cst_68 = arith.constant 3.200000e+01 : f32
    %179 = vector.broadcast %cst_68 : f32 to vector<16x1xf32>
    %180 = arith.divf %178, %179 : vector<16x1xf32>
    %181 = arith.mulf %176, %176 : vector<16x32xf32>
    %cst_69 = arith.constant dense<0.000000e+00> : vector<16xf32>
    %182 = vector.multi_reduction <add>, %181, %cst_69 [1] : vector<16x32xf32> to vector<16xf32>
    %183 = vector.shape_cast %182 : vector<16xf32> to vector<16x1xf32>
    %cst_70 = arith.constant 3.200000e+01 : f32
    %184 = vector.broadcast %cst_70 : f32 to vector<16x1xf32>
    %185 = arith.divf %183, %184 : vector<16x1xf32>
    %186 = arith.mulf %180, %180 : vector<16x1xf32>
    %187 = arith.subf %185, %186 : vector<16x1xf32>
    %188 = vector.broadcast %180 : vector<16x1xf32> to vector<16x32xf32>
    %189 = arith.subf %176, %188 : vector<16x32xf32>
    %cst_71 = arith.constant 9.99999974E-6 : f32
    %190 = vector.broadcast %cst_71 : f32 to vector<16x1xf32>
    %191 = arith.addf %187, %190 : vector<16x1xf32>
    %192 = math.rsqrt %191 : vector<16x1xf32>
    %193 = vector.broadcast %192 : vector<16x1xf32> to vector<16x32xf32>
    %194 = arith.mulf %189, %193 : vector<16x32xf32>
    %195 = vector.extract_strided_slice %4 {offsets = [11, 0], sizes = [1, 32], strides = [1, 1]} : vector<15x32xf32> to vector<1x32xf32>
    %196 = vector.broadcast %195 : vector<1x32xf32> to vector<16x32xf32>
    %197 = arith.mulf %194, %196 : vector<16x32xf32>
    %198 = vector.extract_strided_slice %4 {offsets = [12, 0], sizes = [1, 32], strides = [1, 1]} : vector<15x32xf32> to vector<1x32xf32>
    %199 = vector.broadcast %198 : vector<1x32xf32> to vector<16x32xf32>
    %200 = arith.addf %197, %199 : vector<16x32xf32>
    %201 = arith.truncf %200 : vector<16x32xf32> to vector<16x32xbf16>
    %c0_72 = arith.constant 0 : index
    %c0_73 = arith.constant 0 : index
    %c0_74 = arith.constant 0 : index
    %202 = vector.load %arg14[%c0_72, %c0_73, %c0_74] : memref<1x32x64xbf16, #tpu.memory_space<vmem>>, vector<1x32x64xbf16>
    %203 = vector.shape_cast %202 : vector<1x32x64xbf16> to vector<32x64xbf16>
    %cst_75 = arith.constant dense<0.000000e+00> : vector<16x64xf32>
    %204 = tpu.matmul %201, %203, %cst_75 {dimension_numbers = #tpu.dot_dimension_numbers<[1], [0], [0], [1], [0, 0, 1, 1], [], []>} : vector<16x32xbf16>, vector<32x64xbf16>, vector<16x64xf32> -> vector<16x64xf32>
    %c0_76 = arith.constant 0 : index
    %c0_77 = arith.constant 0 : index
    %c0_78 = arith.constant 0 : index
    %205 = vector.load %arg16[%c0_76, %c0_77, %c0_78] : memref<1x1x64xf32, #tpu.memory_space<vmem>>, vector<1x1x64xf32>
    %206 = vector.shape_cast %205 : vector<1x1x64xf32> to vector<1x64xf32>
    %207 = vector.broadcast %206 : vector<1x64xf32> to vector<16x64xf32>
    %208 = arith.addf %204, %207 : vector<16x64xf32>
    %cst_79 = arith.constant 0.000000e+00 : f32
    %209 = vector.broadcast %cst_79 : f32 to vector<16x64xf32>
    %210 = arith.maximumf %208, %209 : vector<16x64xf32>
    %211 = arith.truncf %210 : vector<16x64xf32> to vector<16x64xbf16>
    %c0_80 = arith.constant 0 : index
    %c0_81 = arith.constant 0 : index
    %c0_82 = arith.constant 0 : index
    %212 = vector.load %arg15[%c0_80, %c0_81, %c0_82] : memref<1x64x32xbf16, #tpu.memory_space<vmem>>, vector<1x64x32xbf16>
    %213 = vector.shape_cast %212 : vector<1x64x32xbf16> to vector<64x32xbf16>
    %cst_83 = arith.constant dense<0.000000e+00> : vector<16x32xf32>
    %214 = tpu.matmul %211, %213, %cst_83 {dimension_numbers = #tpu.dot_dimension_numbers<[1], [0], [0], [1], [0, 0, 1, 1], [], []>} : vector<16x64xbf16>, vector<64x32xbf16>, vector<16x32xf32> -> vector<16x32xf32>
    %215 = vector.extract_strided_slice %4 {offsets = [8, 0], sizes = [1, 32], strides = [1, 1]} : vector<15x32xf32> to vector<1x32xf32>
    %216 = vector.broadcast %215 : vector<1x32xf32> to vector<16x32xf32>
    %217 = arith.addf %214, %216 : vector<16x32xf32>
    %218 = arith.addf %200, %217 : vector<16x32xf32>
    %cst_84 = arith.constant dense<0.000000e+00> : vector<16xf32>
    %219 = vector.multi_reduction <add>, %218, %cst_84 [1] : vector<16x32xf32> to vector<16xf32>
    %220 = vector.shape_cast %219 : vector<16xf32> to vector<16x1xf32>
    %cst_85 = arith.constant 3.200000e+01 : f32
    %221 = vector.broadcast %cst_85 : f32 to vector<16x1xf32>
    %222 = arith.divf %220, %221 : vector<16x1xf32>
    %223 = arith.mulf %218, %218 : vector<16x32xf32>
    %cst_86 = arith.constant dense<0.000000e+00> : vector<16xf32>
    %224 = vector.multi_reduction <add>, %223, %cst_86 [1] : vector<16x32xf32> to vector<16xf32>
    %225 = vector.shape_cast %224 : vector<16xf32> to vector<16x1xf32>
    %cst_87 = arith.constant 3.200000e+01 : f32
    %226 = vector.broadcast %cst_87 : f32 to vector<16x1xf32>
    %227 = arith.divf %225, %226 : vector<16x1xf32>
    %228 = arith.mulf %222, %222 : vector<16x1xf32>
    %229 = arith.subf %227, %228 : vector<16x1xf32>
    %230 = vector.broadcast %222 : vector<16x1xf32> to vector<16x32xf32>
    %231 = arith.subf %218, %230 : vector<16x32xf32>
    %cst_88 = arith.constant 9.99999974E-6 : f32
    %232 = vector.broadcast %cst_88 : f32 to vector<16x1xf32>
    %233 = arith.addf %229, %232 : vector<16x1xf32>
    %234 = math.rsqrt %233 : vector<16x1xf32>
    %235 = vector.broadcast %234 : vector<16x1xf32> to vector<16x32xf32>
    %236 = arith.mulf %231, %235 : vector<16x32xf32>
    %237 = vector.extract_strided_slice %4 {offsets = [13, 0], sizes = [1, 32], strides = [1, 1]} : vector<15x32xf32> to vector<1x32xf32>
    %238 = vector.broadcast %237 : vector<1x32xf32> to vector<16x32xf32>
    %239 = arith.mulf %236, %238 : vector<16x32xf32>
    %240 = vector.extract_strided_slice %4 {offsets = [14, 0], sizes = [1, 32], strides = [1, 1]} : vector<15x32xf32> to vector<1x32xf32>
    %241 = vector.broadcast %240 : vector<1x32xf32> to vector<16x32xf32>
    %242 = arith.addf %239, %241 : vector<16x32xf32>
    %243 = vector.shape_cast %242 : vector<16x32xf32> to vector<2x8x32xf32>
    %c0_89 = arith.constant 0 : index
    %c0_90 = arith.constant 0 : index
    %c0_91 = arith.constant 0 : index
    %244 = vector.load %arg18[%c0_89, %c0_90, %c0_91] : memref<2x8x32xf32, #tpu.memory_space<vmem>>, vector<2x8x32xf32>
    tpu.vector_store %arg18[%c0_89, %c0_90, %c0_91], %243 {strides = array<i32>} : memref<2x8x32xf32, #tpu.memory_space<vmem>>, vector<2x8x32xf32>,
    return
  }
  func.func @transform_0(%arg0: i32, %arg1: i32) -> (i32, i32, i32) {
    %c0_i32 = arith.constant 0 : i32
    %c0_i32_0 = arith.constant 0 : i32
    %c0_i32_1 = arith.constant 0 : i32
    return %arg0, %c0_i32, %c0_i32_0 : i32, i32, i32
  }
  func.func @transform_1(%arg0: i32, %arg1: i32) -> (i32, i32, i32) {
    %c0_i32 = arith.constant 0 : i32
    %c0_i32_0 = arith.constant 0 : i32
    %c0_i32_1 = arith.constant 0 : i32
    return %arg0, %c0_i32, %c0_i32_0 : i32, i32, i32
  }
  func.func @transform_2(%arg0: i32, %arg1: i32) -> (i32, i32, i32) {
    %c0_i32 = arith.constant 0 : i32
    %c0_i32_0 = arith.constant 0 : i32
    %c0_i32_1 = arith.constant 0 : i32
    return %arg0, %c0_i32, %c0_i32_0 : i32, i32, i32
  }
  func.func @transform_3(%arg0: i32, %arg1: i32) -> (i32, i32, i32) {
    %c0_i32 = arith.constant 0 : i32
    %c0_i32_0 = arith.constant 0 : i32
    %c0_i32_1 = arith.constant 0 : i32
    return %arg0, %c0_i32, %c0_i32_0 : i32, i32, i32
  }
  func.func @transform_4(%arg0: i32, %arg1: i32) -> (i32, i32, i32) {
    %c0_i32 = arith.constant 0 : i32
    %c0_i32_0 = arith.constant 0 : i32
    %c0_i32_1 = arith.constant 0 : i32
    return %arg1, %c0_i32, %c0_i32_0 : i32, i32, i32
  }
  func.func @transform_5(%arg0: i32, %arg1: i32) -> (i32, i32, i32) {
    %c0_i32 = arith.constant 0 : i32
    %c0_i32_0 = arith.constant 0 : i32
    %c0_i32_1 = arith.constant 0 : i32
    return %arg1, %c0_i32, %c0_i32_0 : i32, i32, i32
  }
  func.func @transform_6(%arg0: i32, %arg1: i32) -> (i32, i32, i32) {
    %c0_i32 = arith.constant 0 : i32
    %c0_i32_0 = arith.constant 0 : i32
    %c0_i32_1 = arith.constant 0 : i32
    return %arg1, %c0_i32, %c0_i32_0 : i32, i32, i32
  }
  func.func @transform_7(%arg0: i32, %arg1: i32) -> (i32, i32, i32) {
    %c0_i32 = arith.constant 0 : i32
    %c0_i32_0 = arith.constant 0 : i32
    %c0_i32_1 = arith.constant 0 : i32
    return %arg1, %c0_i32, %c0_i32_0 : i32, i32, i32
  }
  func.func @transform_8(%arg0: i32, %arg1: i32) -> (i32, i32, i32) {
    %c0_i32 = arith.constant 0 : i32
    %c0_i32_0 = arith.constant 0 : i32
    %c0_i32_1 = arith.constant 0 : i32
    return %arg1, %c0_i32, %c0_i32_0 : i32, i32, i32
  }
  func.func @transform_9(%arg0: i32, %arg1: i32) -> (i32, i32, i32) {
    %c0_i32 = arith.constant 0 : i32
    %c0_i32_0 = arith.constant 0 : i32
    %c0_i32_1 = arith.constant 0 : i32
    return %arg1, %c0_i32, %c0_i32_0 : i32, i32, i32
  }
  func.func @transform_10(%arg0: i32, %arg1: i32) -> (i32, i32, i32) {
    %c0_i32 = arith.constant 0 : i32
    %c0_i32_0 = arith.constant 0 : i32
    %c0_i32_1 = arith.constant 0 : i32
    return %arg1, %c0_i32, %c0_i32_0 : i32, i32, i32
  }
  func.func @transform_11(%arg0: i32, %arg1: i32) -> (i32, i32, i32) {
    %c0_i32 = arith.constant 0 : i32
    %c0_i32_0 = arith.constant 0 : i32
    %c0_i32_1 = arith.constant 0 : i32
    return %arg1, %c0_i32, %c0_i32_0 : i32, i32, i32
  }
  func.func @transform_12(%arg0: i32, %arg1: i32) -> (i32, i32, i32) {
    %c0_i32 = arith.constant 0 : i32
    %c0_i32_0 = arith.constant 0 : i32
    %c0_i32_1 = arith.constant 0 : i32
    return %arg1, %c0_i32, %c0_i32_0 : i32, i32, i32
  }
  func.func @transform_13(%arg0: i32, %arg1: i32) -> (i32, i32, i32) {
    %c0_i32 = arith.constant 0 : i32
    %c0_i32_0 = arith.constant 0 : i32
    %c0_i32_1 = arith.constant 0 : i32
    return %arg1, %c0_i32, %c0_i32_0 : i32, i32, i32
  }
  func.func @transform_14(%arg0: i32, %arg1: i32) -> (i32, i32, i32) {
    %c0_i32 = arith.constant 0 : i32
    %c0_i32_0 = arith.constant 0 : i32
    %c0_i32_1 = arith.constant 0 : i32
    return %arg1, %c0_i32, %c0_i32_0 : i32, i32, i32
  }
  func.func @transform_15(%arg0: i32, %arg1: i32) -> (i32, i32, i32) {
    %c0_i32 = arith.constant 0 : i32
    %c0_i32_0 = arith.constant 0 : i32
    %c0_i32_1 = arith.constant 0 : i32
    return %arg1, %c0_i32, %c0_i32_0 : i32, i32, i32
  }
  func.func @transform_16(%arg0: i32, %arg1: i32) -> (i32, i32, i32) {
    %c0_i32 = arith.constant 0 : i32
    %c0_i32_0 = arith.constant 0 : i32
    %c0_i32_1 = arith.constant 0 : i32
    return %arg0, %c0_i32, %c0_i32_0 : i32, i32, i32
  }
}

</mosaic_0001>

<bundles_post_ra>
// kernel: tpu_custom_call.1
= control target key start
LH: loop header
LB: loop body
LE: loop exit
PB: predicated region body
PF: predicated region fallthrough
CT: control target
= control target key end

     0   :  { %s4628_s0 = inlined_call_operand.hbm [shape: f32[2,8,32], index: 0, kind: input, shape index: {}]   ;;  %s4629_s1 = inlined_call_operand.hbm [shape: bf16[2,8,32], index: 1, kind: input, shape index: {}]   ;;  %s4630_s2 = inlined_call_operand.hbm [shape: f32[2,1,8], index: 2, kind: input, shape index: {}]   ;;  %s4631_s3 = inlined_call_operand.vmem [shape: f32[2,1,8], index: 3, kind: input, shape index: {}]   ;;  %s4632_s4 = inlined_call_operand.vmem [shape: bf16[2,32,32], index: 4, kind: input, shape index: {}]   ;;  %s4633_s5 = inlined_call_operand.vmem [shape: bf16[2,32,32], index: 5, kind: input, shape index: {}]   ;;  %s4634_s6 = inlined_call_operand.vmem [shape: bf16[2,32,32], index: 6, kind: input, shape index: {}]   ;;  %s4635_s7 = inlined_call_operand.vmem [shape: bf16[2,32,32], index: 7, kind: input, shape index: {}]   ;;  %s4636_s8 = inlined_call_operand.hbm [shape: bf16[2,32,32], index: 8, kind: input, shape index: {}]   ;;  %s4637_s9 = inlined_call_operand.hbm [shape: bf16[2,32,32], index: 9, kind: input, shape index: {}]   ;;  %s4638_s10 = inlined_call_operand.hbm [shape: bf16[2,32,32], index: 10, kind: input, shape index: {}]   ;;  %s4639_s11 = inlined_call_operand.hbm [shape: bf16[2,32,32], index: 11, kind: input, shape index: {}]   ;;  %s4640_s12 = inlined_call_operand.hbm [shape: bf16[2,32,64], index: 12, kind: input, shape index: {}]   ;;  %s4641_s13 = inlined_call_operand.vmem [shape: bf16[2,64,32], index: 13, kind: input, shape index: {}]   ;;  %s4642_s14 = inlined_call_operand.vmem [shape: f32[2,1,64], index: 14, kind: input, shape index: {}]   ;;  %s4643_s15 = inlined_call_operand.vmem [shape: f32[2,15,32], index: 15, kind: input, shape index: {}]   ;;  %s4644_s16 = inlined_call_operand.hbm [shape: f32[2,8,32], index: 16, kind: output, shape index: {}]  }
   0x1   :  { %4659 = sst [smem:[#allocation30_spill]] %s4628_s0 }
   0x2   :  { %4660 = sst [smem:[#allocation31_spill]] %s4629_s1 }
   0x3   :  { %4661 = sst [smem:[#allocation32_spill]] %s4630_s2 }
   0x4   :  { %4662 = sst [smem:[#allocation33_spill]] %s4631_s3 }
   0x5   :  { %4663 = sst [smem:[#allocation34_spill]] %s4632_s4 }
   0x6   :  { %4664 = sst [smem:[#allocation35_spill]] %s4633_s5 }
   0x7   :  { %4665 = sst [smem:[#allocation36_spill]] %s4634_s6 }
   0x8   :  { %4666 = sst [smem:[#allocation37_spill]] %s4635_s7 }
   0x9   :  { %4667 = sst [smem:[#allocation38_spill]] %s4636_s8 }
   0xa   :  { %4668 = sst [smem:[#allocation39_spill]] %s4638_s10 }
   0xb   :  { %4669 = sst [smem:[#allocation40_spill]] %s4641_s13 }
   0xc   :  { %4670 = sst [smem:[#allocation41_spill]] %s4642_s14 }
   0xd   :  { %4671 = sst [smem:[#allocation42_spill]] %s4643_s15 }
   0xe   :  { %4672 = sst [smem:[#allocation43_spill]] %s4644_s16 }
   0xf   :  { %21 = vsyncpa [#allocation3], 0 }
  0x10   :  { %22 = vsyncpa [#allocation6], 0 }
  0x11   :  { %23 = vsyncpa [#allocation9], 0 }
  0x12   :  { %25 = vsyncpa [#allocation9 + $0x1], 0 }
  0x13   :  { %26 = vsyncpa [#allocation12], 0 }
  0x14   :  { %28 = vsyncpa [#allocation12 + $0x1], 0 }
  0x15   :  { %29 = vsyncpa [#allocation15], 0 }
  0x16   :  { %31 = vsyncpa [#allocation15 + $0x1], 0 }
  0x17   :  { %32 = vsyncpa [#allocation4], 0  ;;  %s3975_s21 = smov 0   ;;  %s3977_s22 = smov 0  }
  0x18   :  { %s3979_s23 = smov 0   ;;  %s3981_s24 = smov 0  }
  0x19   :  { %s3983_s25 = smov 0   ;;  %s3985_s26 = smov 0  }
  0x1a LB: > { %4673 = sst [smem:[#allocation23_spill]] %s3851_s22  ;;  %s4004_s27 = sadd.s32 4294967295, %s3867_s26   ;;  %s3867_s26 = sphi %s3985_s26, %s38_s26   ;;  %s3863_s25 = sphi %s3983_s25, %s4730_s25   ;;  %s3859_s24 = sphi %s3981_s24, %s4729_s24   ;;  %s3855_s23 = sphi %s3979_s23, %s4732_s23   ;;  %s3851_s22 = sphi %s3977_s22, %s4731_s22   ;;  %s3847_s21 = sphi %s3975_s21, %s4727_s21  }
  0x1b   : > { %4674 = sst [smem:[#allocation24_spill]] %s3859_s24  ;;  %p272_p0 = scmp.ne.s32.totalorder %s3855_s23, %s3851_s22 }
  0x1c   : > { %4675 = sst [smem:[#allocation25_spill]] %s3863_s25  ;;  %p273_p1 = scmp.eq.s32.totalorder %s3867_s26, 0 }
  0x1d   : > { %4676 = sst [smem:[#allocation26_spill]] %s3867_s26  ;;  %p278_p2 = scmp.ne.s32.totalorder %s3851_s22, %s3847_s21 }
  0x1e   : > { %p4645_p3 = scmp.eq.s32.totalorder %s4004_s27, 0  ;;  %p4012_p4 = por %p273_p1, %p272_p0 }
  0x1f   : > { %p2973_p5 = scmp.ge.s32.totalorder %s3867_s26, 1  ;;  %p497_p7 = scmp.lt.s32.totalorder %s3867_s26, 3 }
  0x20   : > { %p4019_p6 = por %p4645_p3, %p278_p2  ;;  %s3869_s17 = smov [#allocation5]  }
  0x21   : > { %p4024_p8 = pnand %p2973_p5, %p497_p7  ;;  %s528_s18 = sshll.u32 %s3869_s17, 4  ;;  %s529_s18 = int_to_ptr.vmem [resolvable:$true] %s528_s18 }
  0x22   : > { %s4678_s30 = scalar_select %p4019_p6, 1, 0 }
  0x23   : > { %p3379_p9 = pneg %p4024_p8  ;;  %s47_s20 = sadd.s32 1, %s3863_s25 }
  0x24   : > { %4679 = sst [smem:[#allocation27_spill]] %s4678_s30  ;;  %p3408_p11 = scmp.lt.s32.totalorder %s3867_s26, 2 }
  0x25   : > { %p4032_p10 = pnand %p3379_p9, %p4645_p3  ;;  %p4038_p12 = scmp.ge.s32.totalorder %s47_s20, 2 }
  0x26   : > { %s3566_s28 = scalar_lea.vmem %s529_s18, 128  ;;  %p3574_p5 = scmp.lt.s32.totalorder %s529_s18, %s529_s18 }
  0x27   : > { %p3557_p13 = pneg %p4032_p10  ;;  %p3567_p0 = scmp.ne.s32.totalorder %s529_s18, %s3566_s28 }
  0x28   : > { %p3575_p7 = scmp.lt.s32.totalorder %s3566_s28, %s3566_s28 }
  0x29   : > { %p3569_p1 = pnand %p3567_p0, %p3557_p13 }
  0x2a   : > { %p3576_p9 = por %p3575_p7, %p3574_p5 }
  0x2b   : > { %p3570_p2 = pneg %p3569_p1 }
  0x2d   : > { %p3577_p3 = pnand %p3576_p9, %p3570_p2 }
  0x2f   : > { %3580 = shalt.err (!%p3577_p3)
}
  0x30   : > { %s4647_s17 = smov 64   ;;  %s4649_s16 = smov 4  }
  0x31   : > { %s4683_s1 = sld [smem:[#allocation31_spill]]  ;;  %s4734_s20 = smov (%p4038_p12, %s47_s20), 0 }
  0x32   : > { %4684 = sst [smem:[#allocation28_spill]] %s4734_s20  ;;  %s4651_s14 = sand.u32 1, %s3855_s23  }
  0x33   : > { %s262_s13 = ssub.s32 %s3863_s25, %s4734_s20  ;;  %s4065_s7 = sshll.u32 %s4651_s14, 4 }
  0x34   : > { %p263_p3 = scmp.eq.s32.totalorder %s262_s13, 0  ;;  %s4068_s6 = sshll.u32 %s3863_s25, 8 }
  0x35   : > { %s4685_s5 = sadd.s32 1, %s3855_s23  ;;  %s4687_s8 = sld [smem:[#allocation38_spill]] }
  0x36   : > { %s4073_s3 = scalar_select %p263_p3, %s3855_s23, %s4685_s5  }
  0x37   : > { %3385 = dma.hbm_to_vmem [thread:$0]  (!%p4032_p10), %s4683_s1, 128, %s529_s18, [#allocation6], %s4647_s17, %s4647_s17, %s4649_s16  }
  0x38   : > { %4686 = sst [smem:[#allocation29_spill]] %s4073_s3  ;;  %s602_s17 = scalar_lea.vmem [#allocation8], %s4065_s7 }
  0x39   : > { %s609_s16 = sshll.u32 %s602_s17, 4  ;;  %p4084_p12 = pnand %p3408_p11, %p4012_p4  ;;  %s610_s16 = int_to_ptr.vmem [resolvable:$true] %s609_s16 }
  0x3a   : > { %s4689_s10 = sld [smem:[#allocation39_spill]]  ;;  %s4690_s5 = sand.u32 1, %s3867_s26  }
  0x3b   : > { %s608_s28 = scalar_lea.hbm %s4687_s8, %s4068_s6  ;;  %s4094_s20 = scalar_lea.sflag [#allocation9], %s4690_s5 }
  0x3c   : > { %p4098_p0 = pneg %p4084_p12  ;;  %s3594_s29 = scalar_lea.vmem %s610_s16, 256 }
  0x3d   : > { %p3595_p1 = scmp.ne.s32.totalorder %s610_s16, %s3594_s29  ;;  %s3872_s17 = smov [#allocation8]  }
  0x3e   : > { %s3599_s21 = sshll.u32 %s3872_s17, 4  ;;  %s3600_s21 = int_to_ptr.vmem [resolvable:$false] %s3599_s21 }
  0x3f   : > { %p3597_p4 = pnand %p3595_p1, %p4098_p0  ;;  %s3601_s14 = scalar_lea.vmem %s3600_s21, 512 }
  0x40   : > { %p3602_p2 = scmp.lt.s32.totalorder %s610_s16, %s3600_s21  ;;  %p3603_p5 = scmp.lt.s32.totalorder %s3601_s14, %s3594_s29 }
  0x41   : > { %p3598_p11 = pneg %p3597_p4 }
  0x42   : > { %p3604_p7 = por %p3603_p5, %p3602_p2 }
  0x44   : > { %p3605_p9 = pnand %p3604_p7, %p3598_p11 }
  0x46   : > { %3608 = shalt.err (!%p3605_p9)
}
  0x47   : > { %s4692_s15 = smov 4   ;;  %s4693_s5 = smov 64  }
  0x48   : > { %3392 = dma.hbm_to_vmem [thread:$0]  (!%p4084_p12), %s608_s28, 256, %s610_s16, %s4094_s20, %s4693_s5, %s4693_s5, %s4692_s15  }
  0x49   : > { %s644_s1 = scalar_lea.vmem [#allocation11], %s4065_s7  ;;  %s4694_s17 = sand.u32 1, %s3867_s26  }
  0x4a   : > { %s651_s8 = sshll.u32 %s644_s1, 4  ;;  %s4113_s25 = scalar_lea.sflag [#allocation12], %s4694_s17  ;;  %s652_s8 = int_to_ptr.vmem [resolvable:$true] %s651_s8 }
  0x4b   : > { %s3622_s29 = scalar_lea.vmem %s652_s8, 256  ;;  %s3873_s21 = smov [#allocation11]  }
  0x4c   : > { %p3623_p3 = scmp.ne.s32.totalorder %s652_s8, %s3622_s29  ;;  %s3627_s14 = sshll.u32 %s3873_s21, 4  ;;  %s3628_s14 = int_to_ptr.vmem [resolvable:$false] %s3627_s14 }
  0x4d   : > { %s3629_s3 = scalar_lea.vmem %s3628_s14, 512  ;;  %p3630_p11 = scmp.lt.s32.totalorder %s652_s8, %s3628_s14 }
  0x4e   : > { %p3625_p1 = pnand %p3623_p3, %p4098_p0  ;;  %p3631_p2 = scmp.lt.s32.totalorder %s3629_s3, %s3622_s29 }
  0x50   : > { %p3626_p4 = pneg %p3625_p1  ;;  %p3632_p5 = por %p3631_p2, %p3630_p11 }
  0x52   : > { %p3633_p7 = pnand %p3632_p5, %p3626_p4 }
  0x54   : > { %3636 = shalt.err (!%p3633_p7)
}
  0x55   : > { %s4695_s28 = scalar_lea.hbm %s4689_s10, %s4068_s6  ;;  %s3874_s17 = smov [#allocation2]  }
  0x56   : > { %3398 = dma.hbm_to_vmem [thread:$0]  (!%p4084_p12), %s4695_s28, 256, %s652_s8, %s4113_s25, %s4693_s5, %s4693_s5, %s4692_s15  }
  0x57   : > { %s512_s21 = sshll.u32 %s3874_s17, 4  ;;  %s513_s21 = int_to_ptr.vmem [resolvable:$true] %s512_s21 }
  0x58   : > { %s3648_s3 = scalar_lea.vmem %s513_s21, 256  ;;  %p3656_p4 = scmp.lt.s32.totalorder %s513_s21, %s513_s21 }
  0x59   : > { %p3649_p9 = scmp.ne.s32.totalorder %s513_s21, %s3648_s3  ;;  %p3657_p11 = scmp.lt.s32.totalorder %s3648_s3, %s3648_s3 }
  0x5b   : > { %p3651_p3 = pnand %p3649_p9, %p3557_p13  ;;  %p3658_p2 = por %p3657_p11, %p3656_p4 }
  0x5d   : > { %p3652_p1 = pneg %p3651_p3 }
  0x5f   : > { %p3659_p5 = pnand %p3658_p2, %p3652_p1 }
  0x61   : > { %3662 = shalt.err (!%p3659_p5)
}
  0x62   : > { %s3875_s29 = smov 128   ;;  %s3876_s14 = smov 8  }
  0x63   : > { %s4696_s16 = sld [smem:[#allocation30_spill]]  ;;  %s3877_s28 = smov [#allocation7]  }
  0x64   : > { %s544_s17 = sshll.u32 %s3877_s28, 4  ;;  %s545_s17 = int_to_ptr.vmem [resolvable:$true] %s544_s17 }
  0x65   : > { %s3674_s10 = scalar_lea.vmem %s545_s17, 32  ;;  %p3682_p1 = scmp.lt.s32.totalorder %s545_s17, %s545_s17 }
  0x66   : > { %p3675_p7 = scmp.ne.s32.totalorder %s545_s17, %s3674_s10  ;;  %p3683_p4 = scmp.lt.s32.totalorder %s3674_s10, %s3674_s10 }
  0x68   : > { %p3677_p9 = pnand %p3675_p7, %p3557_p13  ;;  %p3684_p11 = por %p3683_p4, %p3682_p1 }
  0x69   : > { %3382 = dma.hbm_to_vmem [thread:$0]  (!%p4032_p10), %s4696_s16, 256, %s513_s21, [#allocation3], %s3875_s29, %s3875_s29, %s3876_s14  }
  0x6a   : > { %p3678_p3 = pneg %p3677_p9 }
  0x6c   : > { %p3685_p2 = pnand %p3684_p11, %p3678_p3 }
  0x6e   : > { %3688 = shalt.err (!%p3685_p2)
}
  0x6f   : > { %s3878_s3 = smov 16   ;;  %s3879_s21 = smov 1  }
  0x70   : > { %s4697_s2 = sld [smem:[#allocation32_spill]]  ;;  %s629_s16 = scalar_lea.hbm %s4637_s9, %s4068_s6 }
  0x71   : > { %s623_s10 = scalar_lea.vmem [#allocation10], %s4065_s7  ;;  %s671_s24 = scalar_lea.hbm %s4639_s11, %s4068_s6 }
  0x72   : > { %s630_s28 = sshll.u32 %s623_s10, 4  ;;  %s3880_s19 = smov [#allocation10]   ;;  %s631_s28 = int_to_ptr.vmem [resolvable:$true] %s630_s28 }
  0x73   : > { %s3702_s30 = scalar_lea.vmem %s631_s28, 256  ;;  %s3707_s22 = sshll.u32 %s3880_s19, 4  ;;  %s3708_s22 = int_to_ptr.vmem [resolvable:$false] %s3707_s22 }
  0x74   : > { %p3703_p13 = scmp.ne.s32.totalorder %s631_s28, %s3702_s30 }
  0x76   : > { %3388 = dma.hbm_to_vmem [thread:$0]  (!%p4032_p10), %s4697_s2, 32, %s545_s17, [#allocation6], %s3878_s3, %s3878_s3, %s3879_s21  }
  0x77   : > { %p3705_p5 = pnand %p3703_p13, %p4098_p0  ;;  %s3709_s17 = scalar_lea.vmem %s3708_s22, 512 }
  0x78   : > { %p3710_p10 = scmp.lt.s32.totalorder %s631_s28, %s3708_s22  ;;  %p3711_p9 = scmp.lt.s32.totalorder %s3709_s17, %s3702_s30 }
  0x79   : > { %p3706_p7 = pneg %p3705_p5 }
  0x7a   : > { %p3712_p3 = por %p3711_p9, %p3710_p10 }
  0x7c   : > { %p3713_p1 = pnand %p3712_p3, %p3706_p7 }
  0x7e   : > { %3716 = shalt.err (!%p3713_p1)
}
  0x7f   : > { %3395 = dma.hbm_to_vmem [thread:$0]  (!%p4084_p12), %s629_s16, 256, %s631_s28, %s4094_s20, %s4693_s5, %s4693_s5, %s4692_s15  }
  0x80   : > { %s665_s4 = scalar_lea.vmem [#allocation13], %s4065_s7  ;;  %s3881_s22 = smov [#allocation13]  }
  0x81   : > { %s672_s26 = sshll.u32 %s665_s4, 4  ;;  %s3735_s30 = sshll.u32 %s3881_s22, 4  ;;  %s673_s26 = int_to_ptr.vmem [resolvable:$true] %s672_s26  ;;  %s3736_s30 = int_to_ptr.vmem [resolvable:$false] %s3735_s30 }
  0x82   : > { %s3730_s3 = scalar_lea.vmem %s673_s26, 256  ;;  %s3737_s21 = scalar_lea.vmem %s3736_s30, 512 }
  0x83   : > { %p3731_p4 = scmp.ne.s32.totalorder %s673_s26, %s3730_s3  ;;  %p3738_p13 = scmp.lt.s32.totalorder %s673_s26, %s3736_s30 }
  0x84   : > { %p3739_p5 = scmp.lt.s32.totalorder %s3737_s21, %s3730_s3 }
  0x85   : > { %p3733_p11 = pnand %p3731_p4, %p4098_p0 }
  0x86   : > { %p3740_p7 = por %p3739_p5, %p3738_p13 }
  0x87   : > { %p3734_p2 = pneg %p3733_p11 }
  0x89   : > { %p3741_p10 = pnand %p3740_p7, %p3734_p2 }
  0x8b   : > { %3744 = shalt.err (!%p3741_p10)
}
  0x8c   : > { %3401 = dma.hbm_to_vmem [thread:$0]  (!%p4084_p12), %s671_s24, 256, %s673_s26, %s4113_s25, %s4693_s5, %s4693_s5, %s4692_s15  }
  0x8d   : > { %s692_s1 = scalar_lea.hbm %s4640_s12, %s4068_s6  ;;  %s686_s16 = scalar_lea.vmem [#allocation14], %s4065_s7 }
  0x8e   : > { %s693_s10 = sshll.u32 %s686_s16, 4  ;;  %s4698_s28 = sand.u32 1, %s3855_s23   ;;  %s694_s10 = int_to_ptr.vmem [resolvable:$true] %s693_s10 }
  0x8f   : > { %s683_s19 = scalar_lea.sflag [#allocation15], %s4698_s28  ;;  %s3758_s17 = scalar_lea.vmem %s694_s10, 256 }
  0x90   : > { %p3759_p9 = scmp.ne.s32.totalorder %s694_s10, %s3758_s17  ;;  %s3882_s4 = smov [#allocation14]  }
  0x91   : > { %s3763_s3 = sshll.u32 %s3882_s4, 4  ;;  %s3764_s3 = int_to_ptr.vmem [resolvable:$false] %s3763_s3 }
  0x92   : > { %p3761_p3 = pnand %p3759_p9, %p4098_p0  ;;  %s3765_s22 = scalar_lea.vmem %s3764_s3, 512 }
  0x93   : > { %p3766_p4 = scmp.lt.s32.totalorder %s694_s10, %s3764_s3  ;;  %p3767_p11 = scmp.lt.s32.totalorder %s3765_s22, %s3758_s17 }
  0x94   : > { %p3762_p1 = pneg %p3761_p3 }
  0x95   : > { %p3768_p2 = por %p3767_p11, %p3766_p4 }
  0x97   : > { %p3769_p13 = pnand %p3768_p2, %p3762_p1 }
  0x99   : > { %3772 = shalt.err (!%p3769_p13)
}
  0x9a   : > { %3404 = dma.hbm_to_vmem [thread:$0]  (!%p4084_p12), %s692_s1, 256, %s694_s10, %s683_s19, %s4693_s5, %s4693_s5, %s4692_s15  }
  0x9b   : > { %727 = sbr.rel (%p4024_p8) target bundleno = 4631 (0x1217), region = 84  ;;  %p4699_p0 = scmp.eq.s32.totalorder (!%p4024_p8), %s4004_s27, 0 }
  0xa0   : > { %3822 = dma.done.wait (%p4699_p0), [#allocation3], 256   ;;  %p4700_p5 = pmov %p4699_p0 }
  0xa1   : > { %p4701_p7 = pmov %p4699_p0 }
  0xa2   : > { %3824 = vsyncadd (%p4700_p5), [#allocation3], 4294967040 }
  0xa3   : > { %3826 = dma.done.wait (%p4701_p7), [#allocation6], 160   ;;  %p4702_p10 = pmov %p4699_p0 }
  0xa4   : > { %s4703_s6 = sld [smem:[#allocation23_spill]]  ;;  %s741_s24 = sand.u32 1, %s4004_s27  }
  0xa5   : > { %3828 = vsyncadd (%p4702_p10), [#allocation6], 4294967136  ;;  %s742_s0 = scalar_lea.sflag [#allocation9], %s741_s24 }
  0xaa   : > { %s743_s25 = sand.u32 1, %s4703_s6  }
  0xab   : > { %s4201_s13 = sshll.u32 %s743_s25, 4 }
  0xac   : > { %3830 = dma.done.wait (%p4019_p6), %s742_s0, 512  }
  0xad   : > { %3832 = vsyncadd (%p4019_p6), %s742_s0, 4294966784  ;;  %s760_s5 = scalar_lea.sflag [#allocation12], %s741_s24 }
  0xae   : > { %3834 = dma.done.wait (%p4019_p6), %s760_s5, 512  }
  0xaf   : > { %3836 = vsyncadd (%p4019_p6), %s760_s5, 4294966784  ;;  %s778_s21 = scalar_lea.sflag [#allocation15], %s743_s25 }
  0xb0   : > { %3838 = dma.done.wait (%p4019_p6), %s778_s21, 256  }
  0xb1   : > { %3840 = vsyncadd (%p4019_p6), %s778_s21, 4294967040  ;;  %s4705_s29 = sld [smem:[#allocation24_spill]] }
  0xb2   : > { %s4706_s28 = sld [smem:[#allocation34_spill]] }
  0xb3   : > { %s4707_s3 = sld [smem:[#allocation35_spill]] }
  0xb4   : > { %s4708_s24 = sld [smem:[#allocation36_spill]] }
  0xb5   : > { %s4709_s21 = sld [smem:[#allocation37_spill]] }
  0xb6   : > { %s4710_s18 = sld [smem:[#allocation40_spill]] }
  0xb7   : > { %p890_p8 = scmp.lt.s32.totalorder %s4705_s29, 1  ;;  %s4712_s2 = sld [smem:[#allocation42_spill]] }
  0xb8   : > { %p3015_p6 = scmp.ne.s32.totalorder %s4705_s29, 0 }
  0xb9   : > { %s4222_s14 = scalar_select %p890_p8, %s4705_s29, 1 }
  0xbb   : > { %s3091_s8 = sshll.u32 %s4222_s14, 4  ;;  %s3095_s1 = sshll.u32 %s4222_s14, 5 }
  0xbc   : > { %s894_s19 = scalar_lea.vmem %s4706_s28, %s3091_s8  ;;  %s899_s22 = scalar_lea.vmem %s4707_s3, %s3091_s8 }
  0xbd   : > { %s4235_s25 = scalar_lea.vmem %s4708_s24, %s3091_s8  ;;  %s4240_s20 = scalar_lea.vmem %s4709_s21, %s3091_s8 }
  0xbe   : > { %s4245_s15 = scalar_lea.vmem %s4710_s18, %s3095_s1  ;;  %s4711_s28 = sld [smem:[#allocation41_spill]] }
  0xbf   : > { %s4254_s6 = scalar_lea.vmem %s4712_s2, %s3091_s8 }
  0xc0   : > { %928 = sbr.rel (%p3015_p6) target bundleno = 199 (0xc7), region = 120 }
  0xc4   : > { %s917_s17 = scalar_lea.vmem %s4711_s28, %s4222_s14 }
  0xc5   : > { %v929_v0 = vld [vmem:[#allocation2] sm:$0xff]  ;;  %vm931_vm0 = vcmask 261120   ;;  %v930_v1 = vld [vmem:[#allocation2 + $0x8] sm:$0xff] }
  0xc6   : > { %932 = vst.msk [vmem:[#allocation16] sm:$0xff] %vm931_vm0, %v929_v0  ;;  %933 = vst.msk [vmem:[#allocation16 + $0x8] sm:$0xff] %vm931_vm0, %v930_v1 }
  0xc7 PF: > { %v3488_v2 = vld [vmem:[%s899_s22 + $0x8] sm:$0xff]   ;;  %v3883_v3 = vmov 0.0   ;;  %v3490_v5 = vld [vmem:[%s899_s22] sm:$0xff]   ;;  %vm3884_vm1 = vmmov 0   ;;  %vm963_vm2 = vcmask 261120   ;;  %v947_v12 = vlaneseq  ;;  %s3885_s2 = smov 112  }
  0xc8   : > { %3181 = vmatprep.subr.bf16.mxu1 %v3883_v3  ;;  %3173 = vmatprep.subr.bf16.mxu0 %v3883_v3  ;;  %v3489_v4 = vld [vmem:[%s894_s19 + $0x8] sm:$0xff]   ;;  %v3491_v6 = vld [vmem:[%s894_s19] sm:$0xff]   ;;  %vm1160_vm3 = vcmask 130048   ;;  %vm1281_vm4 = vcmask 1043456   ;;  %v4324_v49 = vld [vmem:[#allocation7] ss:$0 sm:$0xff] }
  0xc9   : > { %3182 = vmatpush3.bf16.msra.mxu1 %v3488_v2  ;;  %3185 = vmatprep.mubr.msk.bf16.mxu1 %vm3884_vm1, %v3883_v3  ;;  %v3492_v10 = vld [vmem:[%s4235_s25 + $0x8] sm:$0xff]   ;;  %v3493_v11 = vld [vmem:[%s4235_s25] sm:$0xff]   ;;  %v4286_v13 = vshrl.u32 %v947_v12, 7  ;;  %vm1253_vm5 = vcmask 64512   ;;  %v4327_v53 = vld [vmem:[#allocation7 + $0x1] ss:$0 sm:$0xff] }
  0xca   : > { %3174 = vmatpush3.bf16.msra.mxu0 %v3489_v4  ;;  %3183 = vmatprep.subr.bf16.mxu1 %v3883_v3  ;;  %v4290_v15 = vld [vmem:[%s4254_s6] sm:$0xff]  ;;  %s3886_s18 = smov 16   ;;  %s4713_s26 = scalar_lea.vmem [#allocation10], %s4201_s13  ;;  %vm2592_vm6 = vcmask 523264  }
  0xcb   : > { %3175 = vmatprep.subr.bf16.mxu0 %v3883_v3  ;;  %3177 = vmatprep.mubr.msk.bf16.mxu0 %vm3884_vm1, %v3883_v3  ;;  %v1020_v14 = vsub.s32 1, %v4286_v13  ;;  %v949_v17 = vsub.s32 0, %v4286_v13  ;;  %v1087_v37 = vsub.s32 2, %v4286_v13  ;;  %s4714_s30 = smov %s4713_s26  ;;  %s4717_s8 = scalar_lea.vmem [#allocation11], %s4201_s13 }
  0xcc   : > { %s4718_s1 = smov %s4717_s8  ;;  %s4719_s7 = sld [smem:[#allocation33_spill]] }
  0xcd   : > { %v4263_v7 = vld [vmem:[#allocation16] sm:$0xff]  ;;  %v4265_v8 = vld [vmem:[#allocation16 + $0x8] sm:$0xff]  ;;  %3184 = vmatpush3.bf16.msra.mxu1 %v3490_v5  ;;  %v1021_v16 = vrot.slane %v4290_v15, %v1020_v14  ;;  %v950_v20 = vrot.slane %v4290_v15, %v949_v17  ;;  %v1088_v38 = vrot.slane %v4290_v15, %v1087_v37  ;;  %s4720_s0 = scalar_lea.vmem [#allocation13], %s4201_s13  ;;  %s4722_s21 = scalar_lea.vmem [#allocation14], %s4201_s13 }
  0xce   : > { %v938_v9 = vpack.c.bf16 %v4265_v8, %v4263_v7  ;;  %3176 = vmatpush3.bf16.msra.mxu0 %v3491_v6  ;;  %3197 = vmatprep.subr.bf16.mxu1 %v3883_v3  ;;  %s4721_s5 = smov %s4720_s0  ;;  %s4723_s16 = smov %s4722_s21 }
  0xcf   : > { %3189 = vmatprep.subr.bf16.mxu0 %v3883_v3  ;;  %p3412_p12 = scmp.eq.s32.totalorder %s4004_s27, 1 }
  0xd0   : > { %3186 = vmatmul.mubr.msk.bf16.vlgmr.msra.gmra.mxu1 %vm963_vm2, %v938_v9 }
  0xd1   : > { %3178 = vmatmul.mubr.msk.bf16.vlgmr.msra.gmra.mxu0 %vm963_vm2, %v938_v9  ;;  %3199 = vmatprep.mubr.msk.bf16.mxu1 %vm3884_vm1, %v3883_v3 }
  0xd2   : > { %3190 = vmatpush3.bf16.msra.mxu0 %v3492_v10  ;;  %3193 = vmatprep.mubr.msk.bf16.mxu0 %vm3884_vm1, %v3883_v3 }
  0xd3   : > { %3191 = vmatprep.subr.bf16.mxu0 %v3883_v3 }
  0xd6   : > { %3192 = vmatpush3.bf16.msra.mxu0 %v3493_v11 }
  0xd7   : > { %3203 = vmatprep.subr.bf16.mxu0 %v3883_v3 }
  0xd9   : > { %3194 = vmatmul.mubr.msk.bf16.vlgmr.msra.gmra.mxu0 %vm963_vm2, %v938_v9 }
  0xda   : > { %3205 = vmatprep.mubr.msk.bf16.mxu0 %vm3884_vm1, %v3883_v3 }
 0x190   : > { %v1068_v18 = vpop.f32.mrf.mxu1 }
 0x191   : > { %v1069_v19 = vadd.f32 %v1068_v18, %v1021_v16  ;;  %v1001_v21 = vpop.f32.mrf.mxu0 }
 0x192   : > { %v3187_v22 = vpop.f32.mrf.mxu1  ;;  %v1002_v27 = vadd.f32 %v1001_v21, %v950_v20 }
 0x193   : > { %v3099_v23 = vpack.c.bf16 %v1069_v19, %v1069_v19  ;;  %v3179_v24 = vpop.f32.mrf.mxu0 }
 0x194   : > { %v1071_v25 = vpop.f32.mrf.mxu1  ;;  %v3097_v33 = vpack.c.bf16 %v1002_v27, %v1002_v27 }
 0x195   : > { %v1165_v26 = vsel %vm1160_vm3, %v3099_v23, 0  ;;  %v1072_v28 = vadd.f32 %v1071_v25, %v1021_v16  ;;  %v1004_v29 = vpop.f32.mrf.mxu0 }
 0x196   : > { %v3188_v30 = vpop.f32.mrf.mxu1  ;;  %3198 = vmatpush3.bf16.xpose.msra.mxu1 %v1165_v26  ;;  %v1005_v35 = vadd.f32 %v1004_v29, %v950_v20 }
 0x197   : > { %v3100_v31 = vpack.c.bf16 %v1072_v28, %v1072_v28  ;;  %v3180_v32 = vpop.f32.mrf.mxu0  ;;  %3209 = vmatprep.subr.bf16.mxu1 %v3883_v3 }
 0x198   : > { %v3098_v36 = vpack.c.bf16 %v1005_v35, %v1005_v35 }
 0x199   : > { %v1211_v34 = vsel %vm1160_vm3, %v3100_v31, 0  ;;  %1423 = vrot.lane.b32.xlu1 %v3100_v31, %s3885_s2  ;;  %v1135_v39 = vpop.f32.mrf.mxu0 }
 0x19a   : > { %3204 = vmatpush3.bf16.xpose.msra.mxu0 %v1211_v34  ;;  %v1136_v40 = vadd.f32 %v1135_v39, %v1088_v38 }
 0x19b   : > { %3215 = vmatprep.subr.bf16.mxu0 %v3883_v3  ;;  %v3195_v41 = vpop.f32.mrf.mxu0 }
 0x19c   : > { %v4314_v42 = vpack.c.bf16 %v1136_v40, %v1136_v40 }
 0x19d   : > { %3200 = vmatmul.mubr.msk.bf16.vlgmr.msra.gmra.mxu1 %vm1160_vm3, %v3097_v33  ;;  %v1138_v43 = vpop.f32.mrf.mxu0 }
 0x19e   : > { %3211 = vmatprep.mubr.msk.bf16.mxu1 %vm3884_vm1, %v3883_v3  ;;  %v1283_v44 = vsel %vm1281_vm4, %v4314_v42, 0  ;;  %v1139_v45 = vadd.f32 %v1138_v43, %v1088_v38 }
 0x19f   : > { %v3196_v46 = vpop.f32.mrf.mxu0  ;;  %3210 = vmatpush3.bf16.msra.mxu1 %v1283_v44 }
 0x1a0   : > { %v4318_v47 = vpack.c.bf16 %v1139_v45, %v1139_v45  ;;  %3221 = vmatprep.subr.bf16.mxu1 %v3883_v3 }
 0x1a1   : > { %3206 = vmatmul.mubr.msk.bf16.vlgmr.msra.gmra.mxu0 %vm1160_vm3, %v3098_v36 }
 0x1a2   : > { %3217 = vmatprep.mubr.msk.bf16.mxu0 %vm3884_vm1, %v3883_v3  ;;  %v1329_v48 = vsel %vm1281_vm4, %v4318_v47, 0 }
 0x1a3   : > { %3216 = vmatpush3.bf16.msra.mxu0 %v1329_v48 }
 0x1a4   : > { %3227 = vmatprep.subr.bf16.mxu0 %v3883_v3 }
 0x20b   : > { %v1424_v12 = vpop.permute.xlu1 %1423 }
 0x20c   : > { %v1429_v27 = vsel %vm1160_vm3, %v1424_v12, 0  ;;  %v3494_v12 = vld [vmem:[%s4240_s20 + $0x8] sm:$0xff]  }
 0x25d   : > { %v1201_v50 = vpop.f32.mrf.mxu1 }
 0x25e   : > { %v1202_v51 = vadd.f32 %v4324_v49, %v1201_v50 }
 0x25f   : > { %v3201_v52 = vpop.f32.mrf.mxu1 }
 0x260   : > { %v1254_v54 = vsel %vm1253_vm5, %v1202_v51, -inf }
 0x261   : > { %v1247_v55 = vpop.f32.mrf.mxu0  ;;  %1255 = vmax.xlane.f32.xlu0 %v1254_v54  ;;  %v1204_v56 = vpop.f32.mrf.mxu1 }
 0x262   : > { %v1248_v57 = vadd.f32 %v4327_v53, %v1247_v55 }
 0x263   : > { %v3202_v58 = vpop.f32.mrf.mxu1  ;;  %v3207_v59 = vpop.f32.mrf.mxu0 }
 0x264   : > { %v1257_v60 = vsel %vm1253_vm5, %v1248_v57, -inf }
 0x265   : > { %v1250_v61 = vpop.f32.mrf.mxu0  ;;  %1258 = vmax.xlane.f32.xlu0 %v1257_v60 }
 0x267   : > { %v3208_v62 = vpop.f32.mrf.mxu0 }
 0x27b   : > { %1373 = vrot.lane.b32.xlu0 %v3099_v23, %s3885_s2 }
 0x2ea   : > { %v1256_v63 = vpop.xlane.xlu0 %1255 }
 0x2eb   : > { %v1260_v0 = vsub.f32 %v1202_v51, %v1256_v63 }
 0x2ed   : > { %v1262_v1 = vmul.f32 1.442695, %v1260_v0 }
 0x2ee   : > { %v1259_v2 = vpop.xlane.xlu0 %1258 }
 0x2ef   : > { %3511 = vpow2.f32 %v1262_v1  ;;  %v1261_v4 = vsub.f32 %v1248_v57, %v1259_v2 }
 0x2f1   : > { %v1264_v5 = vmul.f32 1.442695, %v1261_v4 }
 0x2f2   : > { %v1374_v21 = vpop.permute.xlu0 %1373 }
 0x2f3   : > { %3513 = vpow2.f32 %v1264_v5  ;;  %v1379_v24 = vsel %vm1160_vm3, %v1374_v21, 0 }
 0x2fc   : > { %v3512_v6 = vpop.eup %3511 }
 0x2fd   : > { %v1266_v9 = vsel %vm1253_vm5, %v3512_v6, 0.0 }
 0x2fe   : > { %1267 = vadd.xlane.f32.xlu1 %v1266_v9 }
 0x300   : > { %v3514_v10 = vpop.eup %3513 }
 0x301   : > { %v1269_v11 = vsel %vm1253_vm5, %v3514_v10, 0.0 }
 0x302   : > { %1270 = vadd.xlane.f32.xlu1 %v1269_v11 }
 0x313   : > { %1371 = vrot.lane.b32.xlu1 %v3097_v33, %s3885_s2 }
 0x317   : > { %1421 = vrot.lane.b32.xlu1 %v3098_v36, %s3885_s2 }
 0x387   : > { %v1268_v16 = vpop.xlane.xlu1 %1267 }
 0x388   : > { %3515 = vrcp.f32 %v1268_v16  ;;  %v3495_v16 = vld [vmem:[%s4240_s20] sm:$0xff]   ;;  %s4715_s20 = scalar_lea.vmem [#allocation8], %s4201_s13 }
 0x389   : > { %s4716_s29 = smov %s4715_s20 }
 0x38b   : > { %v1271_v18 = vpop.xlane.xlu1 %1270 }
 0x38c   : > { %3517 = vrcp.f32 %v1271_v18 }
 0x38f   : > { %v1372_v28 = vpop.permute.xlu1 %1371 }
 0x393   : > { %v1422_v29 = vpop.permute.xlu1 %1421 }
 0x395   : > { %v3516_v19 = vpop.eup %3515 }
 0x396   : > { %v1274_v20 = vmul.f32 %v3516_v19, %v3512_v6 }
 0x398   : > { %v1276_v22 = vpack.c.bf16 %v1274_v20, %v1274_v20 }
 0x399   : > { %v3518_v23 = vpop.eup %3517 }
 0x39a   : > { %3212 = vmatmul.mubr.msk.bf16.vlgmr.msra.gmra.mxu1 %vm1253_vm5, %v1276_v22  ;;  %v1275_v25 = vmul.f32 %v3518_v23, %v3514_v10 }
 0x39b   : > { %3222 = vmatpush3.bf16.xpose.msra.mxu1 %v1379_v24  ;;  %3223 = vmatprep.mubr.msk.bf16.mxu1 %vm3884_vm1, %v3883_v3 }
 0x39c   : > { %v1277_v26 = vpack.c.bf16 %v1275_v25, %v1275_v25  ;;  %3233 = vmatprep.subr.bf16.mxu1 %v3883_v3 }
 0x39e   : > { %3218 = vmatmul.mubr.msk.bf16.vlgmr.msra.gmra.mxu0 %vm1253_vm5, %v1277_v26 }
 0x39f   : > { %3228 = vmatpush3.bf16.xpose.msra.mxu0 %v1429_v27  ;;  %3229 = vmatprep.mubr.msk.bf16.mxu0 %vm3884_vm1, %v3883_v3 }
 0x3a0   : > { %3239 = vmatprep.subr.bf16.mxu0 %v3883_v3 }
 0x3a2   : > { %3224 = vmatmul.mubr.msk.bf16.vlgmr.msra.gmra.mxu1 %vm1160_vm3, %v1372_v28 }
 0x3a3   : > { %3235 = vmatprep.mubr.msk.bf16.mxu1 %vm3884_vm1, %v3883_v3 }
 0x3a6   : > { %3230 = vmatmul.mubr.msk.bf16.vlgmr.msra.gmra.mxu0 %vm1160_vm3, %v1422_v29 }
 0x3a7   : > { %3241 = vmatprep.mubr.msk.bf16.mxu0 %vm3884_vm1, %v3883_v3 }
 0x45a   : > { %v4353_v30 = vpop.f32.mrf.mxu1 }
 0x45c   : > { %v3213_v31 = vpop.f32.mrf.mxu1 }
 0x45e   : > { %v1322_v32 = vpop.f32.mrf.mxu1  ;;  %v4355_v33 = vpop.f32.mrf.mxu0 }
 0x460   : > { %v3214_v34 = vpop.f32.mrf.mxu1  ;;  %v3219_v35 = vpop.f32.mrf.mxu0 }
 0x461   : > { %v1608_v35 = vsub.s32 3, %v4286_v13 }
 0x462   : > { %v1368_v36 = vpop.f32.mrf.mxu0  ;;  %v1415_v38 = vpop.f32.mrf.mxu1 }
 0x463   : > { %v1416_v39 = vadd.f32 %v4324_v49, %v1415_v38  ;;  %v1609_v36 = vrot.slane %v4290_v15, %v1608_v35 }
 0x464   : > { %v3220_v40 = vpop.f32.mrf.mxu0  ;;  %v3225_v41 = vpop.f32.mrf.mxu1 }
 0x465   : > { %v1471_v43 = vsel %vm1253_vm5, %v1416_v39, -inf }
 0x466   : > { %v1465_v44 = vpop.f32.mrf.mxu0  ;;  %1472 = vmax.xlane.f32.xlu0 %v1471_v43  ;;  %v1418_v45 = vpop.f32.mrf.mxu1 }
 0x467   : > { %v1466_v46 = vadd.f32 %v4327_v53, %v1465_v44 }
 0x468   : > { %v3226_v48 = vpop.f32.mrf.mxu1  ;;  %v3231_v50 = vpop.f32.mrf.mxu0 }
 0x469   : > { %v1474_v51 = vsel %vm1253_vm5, %v1466_v46, -inf }
 0x46a   : > { %1475 = vmax.xlane.f32.xlu1 %v1474_v51  ;;  %v1468_v52 = vpop.f32.mrf.mxu0 }
 0x46b   : > { %v3496_v52 = vld [vmem:[%s4713_s26 + $0x8] sm:$0xff]  }
 0x46c   : > { %v3232_v54 = vpop.f32.mrf.mxu0 }
 0x46d   : > { %v3497_v54 = vld [vmem:[%s4714_s30] sm:$0xff]  }
 0x47b   : > { %1543 = vrot.lane.b32.xlu1 %v4318_v47, %s3885_s2 }
 0x4ef   : > { %v1473_v49 = vpop.xlane.xlu0 %1472 }
 0x4f0   : > { %v1477_v55 = vsub.f32 %v1416_v39, %v1473_v49  ;;  %v3499_v49 = vld [vmem:[%s4715_s20 + $0x8] sm:$0xff]  }
 0x4f2   : > { %v1479_v56 = vmul.f32 1.442695, %v1477_v55  ;;  %v3500_v55 = vld [vmem:[%s4716_s29] sm:$0xff]  }
 0x4f3   : > { %v1476_v57 = vpop.xlane.xlu1 %1475 }
 0x4f4   : > { %3519 = vpow2.f32 %v1479_v56  ;;  %v1478_v58 = vsub.f32 %v1466_v46, %v1476_v57 }
 0x4f6   : > { %v1481_v59 = vmul.f32 1.442695, %v1478_v58 }
 0x4f7   : > { %v1544_v60 = vpop.permute.xlu1 %1543 }
 0x4f8   : > { %3521 = vpow2.f32 %v1481_v59  ;;  %v1549_v53 = vsel %vm1281_vm4, %v1544_v60, 0 }
 0x4f9   : > { %3240 = vmatpush3.bf16.msra.mxu0 %v1549_v53 }
 0x4fa   : > { %3253 = vmatprep.subr.bf16.mxu0 %v3883_v3 }
 0x501   : > { %v3520_v61 = vpop.eup %3519 }
 0x502   : > { %v1483_v62 = vsel %vm1253_vm5, %v3520_v61, 0.0 }
 0x503   : > { %1484 = vadd.xlane.f32.xlu0 %v1483_v62 }
 0x505   : > { %v3522_v63 = vpop.eup %3521 }
 0x506   : > { %v1486_v47 = vsel %vm1253_vm5, %v3522_v63, 0.0 }
 0x507   : > { %1487 = vadd.xlane.f32.xlu0 %v1486_v47 }
 0x51d   : > { %1495 = vrot.lane.b32.xlu0 %v4314_v42, %s3885_s2 }
 0x58c   : > { %v1485_v0 = vpop.xlane.xlu0 %1484 }
 0x58d   : > { %3523 = vrcp.f32 %v1485_v0 }
 0x590   : > { %v1488_v1 = vpop.xlane.xlu0 %1487 }
 0x591   : > { %3525 = vrcp.f32 %v1488_v1 }
 0x594   : > { %v1496_v2 = vpop.permute.xlu0 %1495 }
 0x595   : > { %v1501_v4 = vsel %vm1281_vm4, %v1496_v2, 0 }
 0x596   : > { %3234 = vmatpush3.bf16.msra.mxu1 %v1501_v4 }
 0x597   : > { %3245 = vmatprep.subr.bf16.mxu1 %v3883_v3 }
 0x59a   : > { %v3524_v5 = vpop.eup %3523 }
 0x59b   : > { %v1491_v6 = vmul.f32 %v3524_v5, %v3520_v61 }
 0x59d   : > { %v1493_v9 = vpack.c.bf16 %v1491_v6, %v1491_v6  ;;  %v4415_v6 = vld [vmem:[%s4254_s6 + $0x8] sm:$0x7f] }
 0x59e   : > { %v3526_v10 = vpop.eup %3525 }
 0x59f   : > { %3236 = vmatmul.mubr.msk.bf16.vlgmr.msra.gmra.mxu1 %vm1253_vm5, %v1493_v9  ;;  %v1492_v11 = vmul.f32 %v3526_v10, %v3522_v63  ;;  %v1702_v10 = vrot.slane %v4415_v6, %v1020_v14  ;;  %v3502_v14 = vld [vmem:[%s4718_s1] sm:$0xff]  }
 0x5a0   : > { %3249 = vmatprep.mubr.msk.bf16.mxu1 %vm3884_vm1, %v3883_v3  ;;  %3246 = vmatpush3.bf16.msra.mxu1 %v3494_v12 }
 0x5a1   : > { %v1494_v42 = vpack.c.bf16 %v1492_v11, %v1492_v11  ;;  %3247 = vmatprep.subr.bf16.mxu1 %v3883_v3 }
 0x5a3   : > { %3242 = vmatmul.mubr.msk.bf16.vlgmr.msra.gmra.mxu0 %vm1253_vm5, %v1494_v42 }
 0x5a4   : > { %3257 = vmatprep.mubr.msk.bf16.mxu0 %vm3884_vm1, %v3883_v3  ;;  %3248 = vmatpush3.bf16.msra.mxu1 %v3495_v16  ;;  %v1708_v16 = vrot.slane %v4415_v6, %v1087_v37  ;;  %v1790_v37 = vsub.s32 5, %v4286_v13 }
 0x5a5   : > { %3261 = vmatprep.subr.bf16.mxu1 %v3883_v3  ;;  %3254 = vmatpush3.bf16.msra.mxu0 %v3499_v49 }
 0x5a6   : > { %3255 = vmatprep.subr.bf16.mxu0 %v3883_v3 }
 0x5a9   : > { %3256 = vmatpush3.bf16.msra.mxu0 %v3500_v55 }
 0x5aa   : > { %3269 = vmatprep.subr.bf16.mxu0 %v3883_v3 }
 0x65f   : > { %v1537_v18 = vpop.f32.mrf.mxu1 }
 0x661   : > { %v3237_v19 = vpop.f32.mrf.mxu1 }
 0x663   : > { %v1540_v20 = vpop.f32.mrf.mxu1  ;;  %v1585_v21 = vpop.f32.mrf.mxu0 }
 0x664   : > { %v3478_v22 = vpack.i.bf16 %v1585_v21, %v1537_v18 }
 0x665   : > { %v3238_v23 = vpop.f32.mrf.mxu1  ;;  %v3243_v24 = vpop.f32.mrf.mxu0 }
 0x666   : > { %3479 = vrot.lane.b32.xlu1 %v3478_v22, %s3886_s18  ;;  %v3501_v23 = vld [vmem:[%s4717_s8 + $0x8] sm:$0xff]  }
 0x667   : > { %v1588_v25 = vpop.f32.mrf.mxu0 }
 0x668   : > { %v1791_v25 = vrot.slane %v4290_v15, %v1790_v37 }
 0x669   : > { %v3244_v26 = vpop.f32.mrf.mxu0 }
 0x6d8   : > { %v3480_v27 = vpop.permute.xlu1 %3479 }
 0x6d9   : > { %v3482_v28 = vunpack.i.h.bf16 %v3480_v27  ;;  %v3481_v29 = vunpack.i.l.bf16 %v3480_v27 }
 0x6db   : > { %v1600_v31 = vsel %vm1160_vm3, %v4355_v33, %v3482_v28  ;;  %v1599_v32 = vsel %vm1160_vm3, %v4353_v30, %v3481_v29 }
 0x6dc   : > { %v1601_v34 = vpack.c.bf16 %v1600_v31, %v1599_v32 }
 0x6de   : > { %3250 = vmatmul.mubr.msk.bf16.vlgmr.msra.gmra.mxu1 %vm963_vm2, %v1601_v34 }
 0x6df   : > { %3265 = vmatprep.mubr.msk.bf16.mxu1 %vm3884_vm1, %v3883_v3  ;;  %3262 = vmatpush3.bf16.msra.mxu1 %v3496_v52 }
 0x6e0   : > { %3263 = vmatprep.subr.bf16.mxu1 %v3883_v3 }
 0x6e3   : > { %3264 = vmatpush3.bf16.msra.mxu1 %v3497_v54 }
 0x6e4   : > { %3277 = vmatprep.subr.bf16.mxu1 %v3883_v3 }
 0x79e   : > { %v1659_v38 = vpop.f32.mrf.mxu1 }
 0x79f   : > { %v1660_v39 = vadd.f32 %v1659_v38, %v1609_v36 }
 0x7a0   : > { %v3251_v40 = vpop.f32.mrf.mxu1 }
 0x7a1   : > { %v1666_v33 = vadd.f32 %v1660_v39, %v4263_v7  ;;  %v1720_v40 = vsub.s32 4, %v4286_v13 }
 0x7a2   : > { %v1662_v41 = vpop.f32.mrf.mxu1 }
 0x7a3   : > { %v1663_v30 = vadd.f32 %v1662_v41, %v1609_v36  ;;  %v1668_v43 = vsel %vm963_vm2, %v1666_v33, 0.0  ;;  %v1677_v44 = vmul.f32 %v1666_v33, %v1666_v33 }
 0x7a4   : > { %1669 = vadd.xlane.f32.xlu1 %v1668_v43  ;;  %v3252_v45 = vpop.f32.mrf.mxu1  ;;  %v1865_v43 = vsub.s32 6, %v4286_v13 }
 0x7a5   : > { %v1667_v46 = vadd.f32 %v1663_v30, %v4265_v8  ;;  %v1679_v48 = vsel %vm963_vm2, %v1677_v44, 0.0  ;;  %v3498_v8 = vld [vmem:[#allocation5] sm:$0xff]  }
 0x7a6   : > { %1680 = vadd.xlane.f32.xlu0 %v1679_v48  ;;  %3266 = vmatmul.mubr.msk.bf16.vlgmr.msra.gmra.mxu1 %vm963_vm2, %v3498_v8 }
 0x7a7   : > { %v1671_v50 = vsel %vm963_vm2, %v1667_v46, 0.0  ;;  %v1678_v51 = vmul.f32 %v1667_v46, %v1667_v46  ;;  %3279 = vmatprep.mubr.msk.bf16.mxu1 %vm3884_vm1, %v3883_v3 }
 0x7a9   : > { %v1682_v7 = vsel %vm963_vm2, %v1678_v51, 0.0 }
 0x7aa   : > { %1672 = vadd.xlane.f32.xlu0 %v1671_v50  ;;  %v1866_v50 = vrot.slane %v4290_v15, %v1865_v43 }
 0x7ae   : > { %1683 = vadd.xlane.f32.xlu0 %v1682_v7 }
 0x82d   : > { %v1670_v56 = vpop.xlane.xlu1 %1669 }
 0x82e   : > { %v1675_v57 = vmul.f32 0.03125, %v1670_v56 }
 0x82f   : > { %v1681_v58 = vpop.xlane.xlu0 %1680 }
 0x830   : > { %v1687_v59 = vmul.f32 %v1675_v57, %v1675_v57  ;;  %v1685_v60 = vmul.f32 0.03125, %v1681_v58  ;;  %v1691_v9 = vsub.f32 %v1666_v33, %v1675_v57  ;;  %v1721_v33 = vrot.slane %v4290_v15, %v1720_v40 }
 0x832   : > { %v1689_v53 = vsub.f32 %v1685_v60, %v1687_v59 }
 0x833   : > { %v1673_v61 = vpop.xlane.xlu0 %1672 }
 0x834   : > { %v1693_v62 = vadd.f32 1e-05, %v1689_v53  ;;  %v1676_v63 = vmul.f32 0.03125, %v1673_v61  ;;  %v4479_v53 = vld [vmem:[%s4719_s7] ss:$0 sm:$0xff] }
 0x836   : > { %3527 = vrsqrt.f32 %v1693_v62  ;;  %v1688_v0 = vmul.f32 %v1676_v63, %v1676_v63  ;;  %v1692_v42 = vsub.f32 %v1667_v46, %v1676_v63 }
 0x837   : > { %v1684_v47 = vpop.xlane.xlu0 %1683 }
 0x838   : > { %v1686_v1 = vmul.f32 0.03125, %v1684_v47  ;;  %v4485_v47 = vld [vmem:[%s4719_s7 + $0x1] ss:$0 sm:$0xff] }
 0x83a   : > { %v1690_v2 = vsub.f32 %v1686_v1, %v1688_v0 }
 0x83c   : > { %v1694_v4 = vadd.f32 1e-05, %v1690_v2 }
 0x83e   : > { %3529 = vrsqrt.f32 %v1694_v4 }
 0x843   : > { %v3528_v5 = vpop.eup %3527 }
 0x844   : > { %v1697_v11 = vmul.f32 %v3528_v5, %v1691_v9 }
 0x846   : > { %v1703_v19 = vmul.f32 %v1702_v10, %v1697_v11 }
 0x848   : > { %v4423_v21 = vadd.f32 %v1708_v16, %v1703_v19 }
 0x84b   : > { %v3530_v12 = vpop.eup %3529 }
 0x84c   : > { %v1698_v18 = vmul.f32 %v3530_v12, %v1692_v42 }
 0x84e   : > { %v1704_v20 = vmul.f32 %v1702_v10, %v1698_v18 }
 0x850   : > { %v4425_v22 = vadd.f32 %v1708_v16, %v1704_v20 }
 0x852   : > { %v1711_v24 = vpack.c.bf16 %v4425_v22, %v4423_v21 }
 0x854   : > { %3258 = vmatmul.mubr.msk.bf16.vlgmr.msra.gmra.mxu0 %vm963_vm2, %v1711_v24 }
 0x855   : > { %3270 = vmatpush3.bf16.msra.mxu0 %v3501_v23  ;;  %3273 = vmatprep.mubr.msk.bf16.mxu0 %vm3884_vm1, %v3883_v3 }
 0x856   : > { %3271 = vmatprep.subr.bf16.mxu0 %v3883_v3 }
 0x859   : > { %3272 = vmatpush3.bf16.msra.mxu0 %v3502_v14 }
 0x85a   : > { %3283 = vmatprep.subr.bf16.mxu0 %v3883_v3 }
 0x85c   : > { %3274 = vmatmul.mubr.msk.bf16.vlgmr.msra.gmra.mxu0 %vm963_vm2, %v3498_v8 }
 0x85d   : > { %3285 = vmatprep.mubr.msk.bf16.mxu0 %vm3884_vm1, %v3883_v3 }
 0x866   : > { %v1846_v26 = vpop.f32.mrf.mxu1 }
 0x867   : > { %v1847_v27 = vadd.f32 %v1846_v26, %v1791_v25 }
 0x868   : > { %v3267_v28 = vpop.f32.mrf.mxu1 }
 0x869   : > { %v3105_v29 = vpack.c.bf16 %v1847_v27, %v1847_v27 }
 0x86a   : > { %v1849_v31 = vpop.f32.mrf.mxu1 }
 0x86b   : > { %v1942_v32 = vsel %vm1160_vm3, %v3105_v29, 0  ;;  %v1850_v34 = vadd.f32 %v1849_v31, %v1791_v25 }
 0x86c   : > { %v3268_v36 = vpop.f32.mrf.mxu1  ;;  %3278 = vmatpush3.bf16.xpose.msra.mxu1 %v1942_v32 }
 0x86d   : > { %v4446_v38 = vpack.c.bf16 %v1850_v34, %v1850_v34  ;;  %3289 = vmatprep.subr.bf16.mxu1 %v3883_v3 }
 0x86f   : > { %v1988_v39 = vsel %vm1160_vm3, %v4446_v38, 0 }
 0x870   : > { %3284 = vmatpush3.bf16.xpose.msra.mxu0 %v1988_v39 }
 0x871   : > { %3295 = vmatprep.subr.bf16.mxu0 %v3883_v3 }
 0x914   : > { %v1771_v41 = vpop.f32.mrf.mxu0 }
 0x915   : > { %v1772_v30 = vadd.f32 %v1771_v41, %v1721_v33 }
 0x916   : > { %v3259_v44 = vpop.f32.mrf.mxu0 }
 0x917   : > { %v3103_v45 = vpack.c.bf16 %v1772_v30, %v1772_v30 }
 0x918   : > { %v1774_v46 = vpop.f32.mrf.mxu0 }
 0x919   : > { %v1775_v48 = vadd.f32 %v1774_v46, %v1721_v33  ;;  %3280 = vmatmul.mubr.msk.bf16.vlgmr.msra.gmra.mxu1 %vm1160_vm3, %v3103_v45 }
 0x91a   : > { %v3260_v51 = vpop.f32.mrf.mxu0  ;;  %3291 = vmatprep.mubr.msk.bf16.mxu1 %vm3884_vm1, %v3883_v3 }
 0x91b   : > { %v3104_v7 = vpack.c.bf16 %v1775_v48, %v1775_v48 }
 0x91c   : > { %v1913_v52 = vpop.f32.mrf.mxu0 }
 0x91d   : > { %3286 = vmatmul.mubr.msk.bf16.vlgmr.msra.gmra.mxu0 %vm1160_vm3, %v3104_v7  ;;  %v1914_v54 = vadd.f32 %v1913_v52, %v1866_v50 }
 0x91e   : > { %v3275_v8 = vpop.f32.mrf.mxu0  ;;  %3297 = vmatprep.mubr.msk.bf16.mxu0 %vm3884_vm1, %v3883_v3 }
 0x91f   : > { %v4466_v49 = vpack.c.bf16 %v1914_v54, %v1914_v54 }
 0x920   : > { %v1916_v55 = vpop.f32.mrf.mxu0 }
 0x921   : > { %v2058_v56 = vsel %vm1281_vm4, %v4466_v49, 0  ;;  %v1917_v57 = vadd.f32 %v1916_v55, %v1866_v50 }
 0x922   : > { %v3276_v58 = vpop.f32.mrf.mxu0  ;;  %3290 = vmatpush3.bf16.msra.mxu1 %v2058_v56 }
 0x923   : > { %v4470_v59 = vpack.c.bf16 %v1917_v57, %v1917_v57  ;;  %3301 = vmatprep.subr.bf16.mxu1 %v3883_v3 }
 0x925   : > { %v2104_v60 = vsel %vm1281_vm4, %v4470_v59, 0 }
 0x926   : > { %3296 = vmatpush3.bf16.msra.mxu0 %v2104_v60 }
 0x927   : > { %3307 = vmatprep.subr.bf16.mxu0 %v3883_v3 }
 0x9d9   : > { %v1978_v61 = vpop.f32.mrf.mxu1 }
 0x9da   : > { %v1979_v62 = vadd.f32 %v4479_v53, %v1978_v61 }
 0x9db   : > { %v3281_v63 = vpop.f32.mrf.mxu1 }
 0x9dc   : > { %v2030_v0 = vsel %vm1253_vm5, %v1979_v62, -inf }
 0x9dd   : > { %v2024_v1 = vpop.f32.mrf.mxu0  ;;  %2031 = vmax.xlane.f32.xlu1 %v2030_v0  ;;  %v1981_v2 = vpop.f32.mrf.mxu1 }
 0x9de   : > { %v2025_v4 = vadd.f32 %v4485_v47, %v2024_v1 }
 0x9df   : > { %v3282_v5 = vpop.f32.mrf.mxu1  ;;  %v3287_v9 = vpop.f32.mrf.mxu0 }
 0x9e0   : > { %v2033_v10 = vsel %vm1253_vm5, %v2025_v4, -inf }
 0x9e1   : > { %2034 = vmax.xlane.f32.xlu0 %v2033_v10  ;;  %v2027_v11 = vpop.f32.mrf.mxu0 }
 0x9e3   : > { %v3288_v42 = vpop.f32.mrf.mxu0 }
 0x9ee   : > { %2148 = vrot.lane.b32.xlu1 %v3105_v29, %s3885_s2 }
 0xa66   : > { %v2032_v12 = vpop.xlane.xlu1 %2031 }
 0xa67   : > { %v2036_v16 = vsub.f32 %v1979_v62, %v2032_v12 }
 0xa69   : > { %v2038_v18 = vmul.f32 1.442695, %v2036_v16 }
 0xa6a   : > { %v2035_v19 = vpop.xlane.xlu0 %2034  ;;  %v2149_v27 = vpop.permute.xlu1 %2148 }
 0xa6b   : > { %3531 = vpow2.f32 %v2038_v18  ;;  %v2037_v20 = vsub.f32 %v2025_v4, %v2035_v19  ;;  %v2154_v39 = vsel %vm1160_vm3, %v2149_v27, 0 }
 0xa6d   : > { %v2040_v23 = vmul.f32 1.442695, %v2037_v20 }
 0xa6f   : > { %3533 = vpow2.f32 %v2040_v23 }
 0xa78   : > { %v3532_v24 = vpop.eup %3531 }
 0xa79   : > { %v2042_v14 = vsel %vm1253_vm5, %v3532_v24, 0.0 }
 0xa7a   : > { %2043 = vadd.xlane.f32.xlu1 %v2042_v14 }
 0xa7c   : > { %v3534_v25 = vpop.eup %3533 }
 0xa7d   : > { %v2045_v26 = vsel %vm1253_vm5, %v3534_v25, 0.0 }
 0xa7e   : > { %2046 = vadd.xlane.f32.xlu0 %v2045_v26 }
 0xa8b   : > { %2146 = vrot.lane.b32.xlu1 %v3103_v45, %s3885_s2 }
 0xa8f   : > { %2196 = vrot.lane.b32.xlu1 %v3104_v7, %s3885_s2 }
 0xa94   : > { %2198 = vrot.lane.b32.xlu0 %v4446_v38, %s3885_s2 }
 0xb03   : > { %v2044_v28 = vpop.xlane.xlu1 %2043 }
 0xb04   : > { %3535 = vrcp.f32 %v2044_v28 }
 0xb07   : > { %v2047_v29 = vpop.xlane.xlu0 %2046  ;;  %v2147_v44 = vpop.permute.xlu1 %2146 }
 0xb08   : > { %3537 = vrcp.f32 %v2047_v29 }
 0xb0b   : > { %v2199_v41 = vpop.permute.xlu0 %2198  ;;  %v2197_v45 = vpop.permute.xlu1 %2196 }
 0xb0c   : > { %v2204_v30 = vsel %vm1160_vm3, %v2199_v41, 0 }
 0xb11   : > { %v3536_v31 = vpop.eup %3535 }
 0xb12   : > { %v2050_v32 = vmul.f32 %v3536_v31, %v3532_v24  ;;  %v3503_v31 = vld [vmem:[%s4720_s0 + $0x8] sm:$0xff]  }
 0xb14   : > { %v2052_v34 = vpack.c.bf16 %v2050_v32, %v2050_v32  ;;  %v3504_v32 = vld [vmem:[%s4721_s5] sm:$0xff]  }
 0xb15   : > { %v3538_v36 = vpop.eup %3537 }
 0xb16   : > { %3292 = vmatmul.mubr.msk.bf16.vlgmr.msra.gmra.mxu1 %vm1253_vm5, %v2052_v34  ;;  %v2051_v33 = vmul.f32 %v3538_v36, %v3534_v25 }
 0xb17   : > { %3302 = vmatpush3.bf16.xpose.msra.mxu1 %v2154_v39  ;;  %3303 = vmatprep.mubr.msk.bf16.mxu1 %vm3884_vm1, %v3883_v3 }
 0xb18   : > { %v2053_v38 = vpack.c.bf16 %v2051_v33, %v2051_v33  ;;  %3313 = vmatprep.subr.bf16.mxu1 %v3883_v3 }
 0xb1a   : > { %3298 = vmatmul.mubr.msk.bf16.vlgmr.msra.gmra.mxu0 %vm1253_vm5, %v2053_v38 }
 0xb1b   : > { %3308 = vmatpush3.bf16.xpose.msra.mxu0 %v2204_v30  ;;  %3309 = vmatprep.mubr.msk.bf16.mxu0 %vm3884_vm1, %v3883_v3 }
 0xb1c   : > { %3319 = vmatprep.subr.bf16.mxu0 %v3883_v3 }
 0xb1e   : > { %3304 = vmatmul.mubr.msk.bf16.vlgmr.msra.gmra.mxu1 %vm1160_vm3, %v2147_v44 }
 0xb1f   : > { %3315 = vmatprep.mubr.msk.bf16.mxu1 %vm3884_vm1, %v3883_v3 }
 0xb22   : > { %3310 = vmatmul.mubr.msk.bf16.vlgmr.msra.gmra.mxu0 %vm1160_vm3, %v2197_v45 }
 0xb23   : > { %3321 = vmatprep.mubr.msk.bf16.mxu0 %vm3884_vm1, %v3883_v3 }
 0xbd6   : > { %v4513_v46 = vpop.f32.mrf.mxu1 }
 0xbd8   : > { %v3293_v48 = vpop.f32.mrf.mxu1 }
 0xbda   : > { %v2097_v50 = vpop.f32.mrf.mxu1  ;;  %v4515_v51 = vpop.f32.mrf.mxu0 }
 0xbdc   : > { %v3294_v7 = vpop.f32.mrf.mxu1  ;;  %v3299_v52 = vpop.f32.mrf.mxu0 }
 0xbde   : > { %v2143_v54 = vpop.f32.mrf.mxu0  ;;  %v2190_v8 = vpop.f32.mrf.mxu1 }
 0xbdf   : > { %v2191_v55 = vadd.f32 %v4479_v53, %v2190_v8 }
 0xbe0   : > { %v3300_v56 = vpop.f32.mrf.mxu0  ;;  %v3305_v57 = vpop.f32.mrf.mxu1 }
 0xbe1   : > { %v2246_v58 = vsel %vm1253_vm5, %v2191_v55, -inf }
 0xbe2   : > { %v2240_v60 = vpop.f32.mrf.mxu0  ;;  %2247 = vmax.xlane.f32.xlu1 %v2246_v58  ;;  %v2193_v61 = vpop.f32.mrf.mxu1 }
 0xbe3   : > { %v2241_v62 = vadd.f32 %v4485_v47, %v2240_v60 }
 0xbe4   : > { %v3306_v63 = vpop.f32.mrf.mxu1  ;;  %v3311_v0 = vpop.f32.mrf.mxu0 }
 0xbe5   : > { %v2249_v1 = vsel %vm1253_vm5, %v2241_v62, -inf }
 0xbe6   : > { %2250 = vmax.xlane.f32.xlu0 %v2249_v1  ;;  %v2243_v2 = vpop.f32.mrf.mxu0 }
 0xbe8   : > { %v3312_v4 = vpop.f32.mrf.mxu0 }
 0xbf3   : > { %2270 = vrot.lane.b32.xlu1 %v4466_v49, %s3885_s2 }
 0xc6b   : > { %v2248_v53 = vpop.xlane.xlu1 %2247 }
 0xc6c   : > { %v2252_v5 = vsub.f32 %v2191_v55, %v2248_v53  ;;  %v2383_v55 = vsub.s32 7, %v4286_v13  ;;  %v3505_v53 = vld [vmem:[%s4722_s21 + $0x8] sm:$0xff]  }
 0xc6e   : > { %v2254_v9 = vmul.f32 1.442695, %v2252_v5  ;;  %v2384_v56 = vrot.slane %v4290_v15, %v2383_v55  ;;  %v3506_v5 = vld [vmem:[%s4723_s16] sm:$0xff]  }
 0xc6f   : > { %v2251_v10 = vpop.xlane.xlu0 %2250  ;;  %v2271_v11 = vpop.permute.xlu1 %2270 }
 0xc70   : > { %3539 = vpow2.f32 %v2254_v9  ;;  %v2253_v42 = vsub.f32 %v2241_v62, %v2251_v10  ;;  %v2276_v12 = vsel %vm1281_vm4, %v2271_v11, 0 }
 0xc71   : > { %3314 = vmatpush3.bf16.msra.mxu1 %v2276_v12 }
 0xc72   : > { %v2256_v47 = vmul.f32 1.442695, %v2253_v42  ;;  %3325 = vmatprep.subr.bf16.mxu1 %v3883_v3 }
 0xc74   : > { %3541 = vpow2.f32 %v2256_v47 }
 0xc7d   : > { %v3540_v16 = vpop.eup %3539 }
 0xc7e   : > { %v2258_v18 = vsel %vm1253_vm5, %v3540_v16, 0.0 }
 0xc7f   : > { %2259 = vadd.xlane.f32.xlu0 %v2258_v18 }
 0xc81   : > { %v3542_v19 = vpop.eup %3541 }
 0xc82   : > { %v2261_v49 = vsel %vm1253_vm5, %v3542_v19, 0.0 }
 0xc83   : > { %2262 = vadd.xlane.f32.xlu0 %v2261_v49 }
 0xc99   : > { %2318 = vrot.lane.b32.xlu0 %v4470_v59, %s3885_s2 }
 0xd08   : > { %v2260_v20 = vpop.xlane.xlu0 %2259 }
 0xd09   : > { %3543 = vrcp.f32 %v2260_v20 }
 0xd0c   : > { %v2263_v23 = vpop.xlane.xlu0 %2262 }
 0xd0d   : > { %3545 = vrcp.f32 %v2263_v23 }
 0xd10   : > { %v2319_v24 = vpop.permute.xlu0 %2318 }
 0xd11   : > { %v2324_v14 = vsel %vm1281_vm4, %v2319_v24, 0 }
 0xd12   : > { %3320 = vmatpush3.bf16.msra.mxu0 %v2324_v14 }
 0xd13   : > { %3333 = vmatprep.subr.bf16.mxu0 %v3883_v3 }
 0xd16   : > { %v3544_v25 = vpop.eup %3543 }
 0xd17   : > { %v2266_v26 = vmul.f32 %v3544_v25, %v3540_v16  ;;  %v2476_v25 = vrot.slane %v4415_v6, %v1608_v35  ;;  %v3508_v35 = vld [vmem:[%s4245_s15 + $0x10] sm:$0xff]  }
 0xd19   : > { %v2268_v27 = vpack.c.bf16 %v2266_v26, %v2266_v26 }
 0xd1a   : > { %v3546_v28 = vpop.eup %3545 }
 0xd1b   : > { %3316 = vmatmul.mubr.msk.bf16.vlgmr.msra.gmra.mxu1 %vm1253_vm5, %v2268_v27  ;;  %v2267_v29 = vmul.f32 %v3546_v28, %v3542_v19 }
 0xd1c   : > { %3329 = vmatprep.mubr.msk.bf16.mxu1 %vm3884_vm1, %v3883_v3  ;;  %3326 = vmatpush3.bf16.msra.mxu1 %v3503_v31  ;;  %v2482_v31 = vrot.slane %v4415_v6, %v1720_v40  ;;  %v3073_v40 = vld [vmem:[%s917_s17] ss:$0 sm:$0xff] }
 0xd1d   : > { %v2269_v59 = vpack.c.bf16 %v2267_v29, %v2267_v29  ;;  %3327 = vmatprep.subr.bf16.mxu1 %v3883_v3 }
 0xd1f   : > { %3322 = vmatmul.mubr.msk.bf16.vlgmr.msra.gmra.mxu0 %vm1253_vm5, %v2269_v59 }
 0xd20   : > { %3337 = vmatprep.mubr.msk.bf16.mxu0 %vm3884_vm1, %v3883_v3  ;;  %3328 = vmatpush3.bf16.msra.mxu1 %v3504_v32 }
 0xd21   : > { %3341 = vmatprep.subr.bf16.mxu1 %v3883_v3  ;;  %3334 = vmatpush3.bf16.msra.mxu0 %v3505_v53 }
 0xd22   : > { %3335 = vmatprep.subr.bf16.mxu0 %v3883_v3 }
 0xd25   : > { %3336 = vmatpush3.bf16.msra.mxu0 %v3506_v5 }
 0xddb   : > { %v2312_v34 = vpop.f32.mrf.mxu1 }
 0xddd   : > { %v3317_v36 = vpop.f32.mrf.mxu1 }
 0xddf   : > { %v2315_v39 = vpop.f32.mrf.mxu1  ;;  %v2360_v33 = vpop.f32.mrf.mxu0 }
 0xde0   : > { %v3483_v41 = vpack.i.bf16 %v2360_v33, %v2312_v34 }
 0xde1   : > { %v3318_v38 = vpop.f32.mrf.mxu1  ;;  %v3323_v30 = vpop.f32.mrf.mxu0 }
 0xde2   : > { %3484 = vrot.lane.b32.xlu1 %v3483_v41, %s3886_s18  ;;  %v3509_v38 = vld [vmem:[%s4245_s15 + $0x8] sm:$0xff]   ;;  %v3510_v30 = vld [vmem:[%s4245_s15] sm:$0xff]  }
 0xde3   : > { %v2363_v44 = vpop.f32.mrf.mxu0 }
 0xde5   : > { %v3324_v45 = vpop.f32.mrf.mxu0 }
 0xe54   : > { %v3485_v48 = vpop.permute.xlu1 %3484 }
 0xe55   : > { %v3487_v50 = vunpack.i.h.bf16 %v3485_v48  ;;  %v3486_v7 = vunpack.i.l.bf16 %v3485_v48 }
 0xe57   : > { %v2375_v52 = vsel %vm1160_vm3, %v4515_v51, %v3487_v50  ;;  %v2374_v54 = vsel %vm1160_vm3, %v4513_v46, %v3486_v7 }
 0xe58   : > { %v2376_v8 = vpack.c.bf16 %v2375_v52, %v2374_v54 }
 0xe5a   : > { %3330 = vmatmul.mubr.msk.bf16.vlgmr.msra.gmra.mxu1 %vm963_vm2, %v2376_v8 }
 0xe5b   : > { %3349 = vmatprep.mubr.msk.bf16.mxu1 %vm3884_vm1, %v3883_v3 }
 0xf1a   : > { %v2434_v57 = vpop.f32.mrf.mxu1 }
 0xf1b   : > { %v2435_v58 = vadd.f32 %v2434_v57, %v2384_v56 }
 0xf1c   : > { %v3331_v60 = vpop.f32.mrf.mxu1 }
 0xf1d   : > { %v2441_v61 = vadd.f32 %v2435_v58, %v4423_v21 }
 0xf1e   : > { %v2437_v51 = vpop.f32.mrf.mxu1 }
 0xf1f   : > { %v2438_v62 = vadd.f32 %v2437_v51, %v2384_v56  ;;  %v2443_v46 = vsel %vm963_vm2, %v2441_v61, 0.0  ;;  %v2451_v15 = vmul.f32 %v2441_v61, %v2441_v61 }
 0xf20   : > { %2444 = vadd.xlane.f32.xlu1 %v2443_v46  ;;  %v3332_v63 = vpop.f32.mrf.mxu1 }
 0xf21   : > { %v2442_v0 = vadd.f32 %v2438_v62, %v4425_v22  ;;  %v2453_v21 = vsel %vm963_vm2, %v2451_v15, 0.0  ;;  %v3507_v22 = vld [vmem:[%s4245_s15 + $0x18] sm:$0xff]   ;;  %s3887_s15 = smov [#allocation16]  }
 0xf22   : > { %3342 = vmatpush3.bf16.msra.mxu1 %v3507_v22  ;;  %s2692_s14 = sshll.u32 %s3887_s15, 4  ;;  %s2693_s14 = int_to_ptr.vmem [resolvable:$true] %s2692_s14 }
 0xf23   : > { %v2446_v1 = vsel %vm963_vm2, %v2442_v0, 0.0  ;;  %v2452_v2 = vmul.f32 %v2442_v0, %v2442_v0  ;;  %3343 = vmatprep.subr.bf16.mxu1 %v3883_v3  ;;  %s3773_s17 = scalar_lea.vmem %s2693_s14, 256  ;;  %p3780_p4 = scmp.lt.s32.totalorder %s2693_s14, %s2693_s14 }
 0xf24   : > { %2447 = vadd.xlane.f32.xlu0 %v2446_v1  ;;  %p3774_p9 = scmp.ne.s32.totalorder %s2693_s14, %s3773_s17  ;;  %p3781_p11 = scmp.lt.s32.totalorder %s3773_s17, %s3773_s17 }
 0xf25   : > { %v2456_v4 = vsel %vm963_vm2, %v2452_v2, 0.0 }
 0xf26   : > { %2457 = vadd.xlane.f32.xlu1 %v2456_v4  ;;  %3344 = vmatpush3.bf16.msra.mxu1 %v3508_v35  ;;  %p3775_p3 = pnand %p3774_p9, %p3412_p12  ;;  %p3782_p2 = por %p3781_p11, %p3780_p4 }
 0xf27   : > { %3345 = vmatprep.subr.bf16.mxu1 %v3883_v3 }
 0xf28   : > { %2454 = vadd.xlane.f32.xlu0 %v2453_v21  ;;  %p3776_p1 = pneg %p3775_p3 }
 0xf2a   : > { %3346 = vmatpush3.bf16.msra.mxu1 %v3509_v38  ;;  %p3783_p13 = pnand %p3782_p2, %p3776_p1 }
 0xf2b   : > { %3347 = vmatprep.subr.bf16.mxu1 %v3883_v3  ;;  %v2567_v3 = vrot.slane %v4415_v6, %v949_v17 }
 0xf2e   : > { %3348 = vmatpush3.bf16.msra.mxu1 %v3510_v30 }
 0xfa9   : > { %v2445_v9 = vpop.xlane.xlu1 %2444 }
 0xfaa   : > { %v2449_v11 = vmul.f32 0.03125, %v2445_v9 }
 0xfac   : > { %v2461_v19 = vmul.f32 %v2449_v11, %v2449_v11  ;;  %v2465_v28 = vsub.f32 %v2441_v61, %v2449_v11 }
 0xfad   : > { %v2448_v10 = vpop.xlane.xlu0 %2447 }
 0xfae   : > { %v2450_v42 = vmul.f32 0.03125, %v2448_v10 }
 0xfaf   : > { %v2458_v12 = vpop.xlane.xlu1 %2457 }
 0xfb0   : > { %v2462_v47 = vmul.f32 %v2450_v42, %v2450_v42  ;;  %v2460_v16 = vmul.f32 0.03125, %v2458_v12  ;;  %v2466_v26 = vsub.f32 %v2442_v0, %v2450_v42 }
 0xfb1   : > { %v2455_v18 = vpop.xlane.xlu0 %2454 }
 0xfb2   : > { %v2464_v49 = vsub.f32 %v2460_v16, %v2462_v47  ;;  %v2459_v20 = vmul.f32 0.03125, %v2455_v18 }
 0xfb4   : > { %v2468_v23 = vadd.f32 1e-05, %v2464_v49  ;;  %v2463_v24 = vsub.f32 %v2459_v20, %v2461_v19  ;;  %v2672_v49 = vrot.slane %v4415_v6, %v1790_v37 }
 0xfb6   : > { %3547 = vrsqrt.f32 %v2468_v23  ;;  %v2467_v14 = vadd.f32 1e-05, %v2463_v24  ;;  %v2678_v24 = vrot.slane %v4415_v6, %v1865_v43 }
 0xfb8   : > { %3549 = vrsqrt.f32 %v2467_v14 }
 0xfc3   : > { %v3548_v27 = vpop.eup %3547 }
 0xfc4   : > { %v2472_v29 = vmul.f32 %v3548_v27, %v2466_v26 }
 0xfc5   : > { %v3550_v59 = vpop.eup %3549 }
 0xfc6   : > { %v2471_v32 = vmul.f32 %v3550_v59, %v2465_v28  ;;  %v2478_v34 = vmul.f32 %v2476_v25, %v2472_v29 }
 0xfc8   : > { %v2477_v36 = vmul.f32 %v2476_v25, %v2471_v32  ;;  %v2484_v33 = vadd.f32 %v2482_v31, %v2478_v34 }
 0xfca   : > { %v2483_v39 = vadd.f32 %v2482_v31, %v2477_v36 }
 0xfcc   : > { %v2485_v41 = vpack.c.bf16 %v2484_v33, %v2483_v39 }
 0xfce   : > { %3338 = vmatmul.mubr.msk.bf16.vlgmr.msra.gmra.mxu0 %vm963_vm2, %v2485_v41 }
0x108e   : > { %v2546_v44 = vpop.f32.mrf.mxu0 }
0x108f   : > { %v2547_v48 = vadd.f32 %v3073_v40, %v2546_v44 }
0x1090   : > { %v3339_v45 = vpop.f32.mrf.mxu0 }
0x1091   : > { %v2553_v54 = vmax.f32 %v2547_v48, 0.0 }
0x1092   : > { %v2549_v50 = vpop.f32.mrf.mxu0 }
0x1093   : > { %v2550_v7 = vadd.f32 %v3073_v40, %v2549_v50 }
0x1094   : > { %v3340_v52 = vpop.f32.mrf.mxu0 }
0x1095   : > { %v2554_v8 = vmax.f32 %v2550_v7, 0.0 }
0x1097   : > { %v2555_v55 = vpack.c.bf16 %v2554_v8, %v2553_v54 }
0x1099   : > { %3350 = vmatmul.mubr.msk.bf16.vlgmr.msra.gmra.mxu1 %vm2592_vm6, %v2555_v55 }
0x1159   : > { %v2630_v56 = vpop.f32.mrf.mxu1 }
0x115a   : > { %v2631_v57 = vadd.f32 %v2630_v56, %v2567_v3 }
0x115b   : > { %v3351_v58 = vpop.f32.mrf.mxu1 }
0x115c   : > { %v2637_v60 = vadd.f32 %v2631_v57, %v2483_v39 }
0x115d   : > { %v2633_v61 = vpop.f32.mrf.mxu1 }
0x115e   : > { %v2634_v51 = vadd.f32 %v2633_v61, %v2567_v3  ;;  %v2639_v62 = vsel %vm963_vm2, %v2637_v60, 0.0  ;;  %v2647_v46 = vmul.f32 %v2637_v60, %v2637_v60 }
0x115f   : > { %2640 = vadd.xlane.f32.xlu0 %v2639_v62  ;;  %v3352_v63 = vpop.f32.mrf.mxu1 }
0x1160   : > { %v2638_v0 = vadd.f32 %v2634_v51, %v2484_v33  ;;  %v2649_v1 = vsel %vm963_vm2, %v2647_v46, 0.0 }
0x1162   : > { %v2642_v2 = vsel %vm963_vm2, %v2638_v0, 0.0  ;;  %v2648_v15 = vmul.f32 %v2638_v0, %v2638_v0 }
0x1163   : > { %2650 = vadd.xlane.f32.xlu0 %v2649_v1  ;;  %2643 = vadd.xlane.f32.xlu1 %v2642_v2 }
0x1164   : > { %v2652_v17 = vsel %vm963_vm2, %v2648_v15, 0.0 }
0x1167   : > { %2653 = vadd.xlane.f32.xlu1 %v2652_v17 }
0x11e8   : > { %v2641_v4 = vpop.xlane.xlu0 %2640 }
0x11e9   : > { %v2645_v21 = vmul.f32 0.03125, %v2641_v4 }
0x11eb   : > { %v2657_v22 = vmul.f32 %v2645_v21, %v2645_v21  ;;  %v2661_v20 = vsub.f32 %v2637_v60, %v2645_v21 }
0x11ec   : > { %v2651_v53 = vpop.xlane.xlu0 %2650  ;;  %v2644_v5 = vpop.xlane.xlu1 %2643 }
0x11ed   : > { %v2655_v9 = vmul.f32 0.03125, %v2651_v53  ;;  %v2646_v10 = vmul.f32 0.03125, %v2644_v5 }
0x11ef   : > { %v2659_v11 = vsub.f32 %v2655_v9, %v2657_v22  ;;  %v2658_v47 = vmul.f32 %v2646_v10, %v2646_v10  ;;  %v2662_v25 = vsub.f32 %v2638_v0, %v2646_v10 }
0x11f0   : > { %v2654_v42 = vpop.xlane.xlu1 %2653 }
0x11f1   : > { %v2663_v12 = vadd.f32 1e-05, %v2659_v11  ;;  %v2656_v16 = vmul.f32 0.03125, %v2654_v42 }
0x11f3   : > { %3551 = vrsqrt.f32 %v2663_v12  ;;  %v2660_v18 = vsub.f32 %v2656_v16, %v2658_v47 }
0x11f5   : > { %v2664_v19 = vadd.f32 1e-05, %v2660_v18 }
0x11f7   : > { %3553 = vrsqrt.f32 %v2664_v19 }
0x1200   : > { %v3552_v23 = vpop.eup %3551 }
0x1201   : > { %v2667_v14 = vmul.f32 %v3552_v23, %v2661_v20 }
0x1203   : > { %v2673_v26 = vmul.f32 %v2672_v49, %v2667_v14 }
0x1204   : > { %v3554_v27 = vpop.eup %3553 }
0x1205   : > { %v2668_v28 = vmul.f32 %v3554_v27, %v2662_v25  ;;  %v2679_v29 = vadd.f32 %v2678_v24, %v2673_v26 }
0x1207   : > { %v2674_v59 = vmul.f32 %v2672_v49, %v2668_v28  ;;  %2681 = vst.msk [vmem:[#allocation16] sm:$0xff] %vm963_vm2, %v2679_v29 }
0x1209   : > { %v2680_v37 = vadd.f32 %v2678_v24, %v2674_v59 }
0x120b   : > { %2682 = vst.msk [vmem:[#allocation16 + $0x8] sm:$0xff] %vm963_vm2, %v2680_v37 }
0x120c   : > { %3786 = shalt.err (!%p3783_p13)
}
0x120d   : > { %s3888_s4 = smov 128   ;;  %s3889_s3 = smov 8  }
0x120e   : > { %s4725_s18 = sld [smem:[#allocation43_spill]] }
0x1214   : > { %3376 = dma.vmem_to_hbm [thread:$0]  (%p3412_p12), %s2693_s14, 256, %s4725_s18, [#allocation4], %s3888_s4, %s3888_s4, %s3889_s3  }
0x1215   : > { %3842 = dma.done.wait (%p3412_p12), [#allocation4], 256  }
0x1216   : > { %3844 = vsyncadd (%p3412_p12), [#allocation4], 4294967040 }
0x1217 PF: > { %s4726_s26 = sld [smem:[#allocation26_spill]]  ;;  %s4731_s22 = smov %s3855_s23 }
0x1218   : > { %s4727_s21 = sld [smem:[#allocation23_spill]] }
0x1219   : > { %s4728_s30 = sld [smem:[#allocation29_spill]] }
0x121a   : > { %s4729_s24 = sld [smem:[#allocation25_spill]] }
0x121b   : > { %s4730_s25 = sld [smem:[#allocation28_spill]] }
0x121d   : > { %s38_s26 = sadd.s32 1, %s4726_s26  }
0x121e   : > { %p35_p0 = scmp.ge.s32.totalorder %s38_s26, 4  }
0x121f   : > { %s4732_s23 = smov %s4728_s30 }
0x1220   :  { %37 = sbr.rel (!%p35_p0) target bundleno = 26 (0x1a), region = 214 }
0x1225   :  { %2708 = vsyncpa [#allocation3], 1 }
0x1226   :  { %2710 = vsyncpa [#allocation3 + $0x1], 1 }
0x1227   :  { %2711 = vsyncpa [#allocation6], 1 }
0x1228   :  { %2712 = vsyncpa [#allocation9], 1 }
0x1229   :  { %2714 = vsyncpa [#allocation9 + $0x1], 1 }
0x122a   :  { %2715 = vsyncpa [#allocation12], 1 }
0x122b   :  { %2717 = vsyncpa [#allocation12 + $0x1], 1 }
0x122c   :  { %2718 = vsyncpa [#allocation15], 1 }
0x122d   :  { %2720 = vsyncpa [#allocation15 + $0x1], 1 }
0x122e   :  { %2721 = vsyncpa [#allocation4], 1 }
0x122f   :  { %2723 = vsyncpa [#allocation4 + $0x1], 1 }

</bundles_post_ra>
